<compile_context>
chip_gen: v6e
topology: v6e:2x2x1
jax: 0.10.0
libtpu: 0.0.40
codegen_flags: <defaults>
</compile_context>

<pallas_src>
import jax
import jax.numpy as jnp
from jax.experimental import pallas as pl
from jax.experimental.pallas import tpu as pltpu

# ---------------- small, Mixtral-consistent config ----------------
B, S, D = 2, 8, 32
NUM_HEADS = 4
NUM_KV_HEADS = 2
HEAD_DIM = D // NUM_HEADS              # 8
N_REP = NUM_HEADS // NUM_KV_HEADS      # GQA repeat factor
INTERMEDIATE = 64
NUM_EXPERTS = 4
TOP_K = 2
RMS_EPS = 1e-6
ROPE_THETA = 10000.0
T = B * S
Q_D = NUM_HEADS * HEAD_DIM             # 32
KV_D = NUM_KV_HEADS * HEAD_DIM         # 16
QKV_D = Q_D + 2 * KV_D                 # 64 (fused q|k|v columns)
ROPE_D = Q_D + KV_D                    # 48 (columns that receive RoPE)
NEG_INF = -1e30                        # large-negative finite mask (safer than -inf)


# ================= kernel 1: RMSNorm + fused QKV + RoPE + attention + wo + residual =================
def _attn_block_kernel(x_ref, ln_ref, wqkv_ref, wo_ref, cos_ref, sin_ref,
                       rot_ref, bias_ref, o_ref):
    x = x_ref[...].astype(jnp.float32)                                   # [S, D]
    # fused input RMSNorm
    var = jnp.mean(x * x, axis=-1, keepdims=True)
    xn = x * jax.lax.rsqrt(var + RMS_EPS) * ln_ref[...].astype(jnp.float32)
    # fused QKV projection: one MXU pass, lane-dense [S, QKV_D] result
    qkv = jnp.dot(xn, wqkv_ref[...], preferred_element_type=jnp.float32)  # [S, 64]

    # RoPE on the q|k columns: x*cos + (x @ blockdiag(rotate_half)) * sin
    # (rotate-half done on the MXU via a constant block-diagonal matrix -> no XLU shuffles)
    qk = qkv[:, :ROPE_D]
    qk = qk * cos_ref[...] + jnp.dot(qk, rot_ref[...],
                                     preferred_element_type=jnp.float32) * sin_ref[...]

    scale = 1.0 / jnp.sqrt(jnp.float32(HEAD_DIM))
    bias = bias_ref[...]                                                 # [N_REP*S, S]
    head_outs = []
    for g in range(NUM_KV_HEADS):                                        # each K/V loaded once
        k_g = qk[:, Q_D + g * HEAD_DIM:Q_D + (g + 1) * HEAD_DIM]         # [S, Dh]
        v_g = qkv[:, ROPE_D + g * HEAD_DIM:ROPE_D + (g + 1) * HEAD_DIM]  # [S, Dh]
        # stack the N_REP query heads of this KV group as extra rows (taller MXU LHS)
        q_blk = jnp.concatenate(
            [qk[:, (g * N_REP + r) * HEAD_DIM:(g * N_REP + r + 1) * HEAD_DIM]
             for r in range(N_REP)], axis=0)                             # [N_REP*S, Dh]
        s = jax.lax.dot_general(q_blk, k_g, (((1,), (1,)), ((), ())),
                                preferred_element_type=jnp.float32)      # [N_REP*S, S]
        s = s * scale + bias
        m = jnp.max(s, axis=-1, keepdims=True)
        p = jnp.exp(s - m)
        p = p * pl.reciprocal(jnp.sum(p, axis=-1, keepdims=True), approx=True)
        o_blk = jnp.dot(p, v_g, preferred_element_type=jnp.float32)      # [N_REP*S, Dh]
        for r in range(N_REP):
            head_outs.append(o_blk[r * S:(r + 1) * S, :])
    attn = jnp.concatenate(head_outs, axis=-1)                           # [S, Hq*Dh] slab
    out = jnp.dot(attn, wo_ref[...], preferred_element_type=jnp.float32) + x   # + residual
    o_ref[...] = out.astype(o_ref.dtype)


def attn_block(x, params, cos_full, sin_full, bias):
    return pl.pallas_call(
        _attn_block_kernel,
        out_shape=jax.ShapeDtypeStruct((T, D), x.dtype),
        grid=(B,),
        in_specs=[
            pl.BlockSpec((S, D), lambda b: (b, 0)),                 # x (token block per batch)
            pl.BlockSpec((1, D), lambda b: (0, 0)),                 # input_ln
            pl.BlockSpec((D, QKV_D), lambda b: (0, 0)),             # fused wqkv
            pl.BlockSpec((Q_D, D), lambda b: (0, 0)),               # wo
            pl.BlockSpec((S, ROPE_D), lambda b: (b, 0)),            # cos (tiled per head slot)
            pl.BlockSpec((S, ROPE_D), lambda b: (b, 0)),            # sin (tiled per head slot)
            pl.BlockSpec((ROPE_D, ROPE_D), lambda b: (0, 0)),       # rotate-half block-diag
            pl.BlockSpec((N_REP * S, S), lambda b: (0, 0)),         # additive causal mask
        ],
        out_specs=pl.BlockSpec((S, D), lambda b: (b, 0)),
        compiler_params=pltpu.CompilerParams(dimension_semantics=("parallel",)),
    )(x, params["input_ln"], params["wqkv"], params["wo"],
      cos_full, sin_full, params["rope_rot"], bias)


# ============ kernel 2: post-LN + router + top-k + lb-loss + MoE experts + residual ============
def _moe_block_kernel(x_ref, ln_ref, gate_ref, w1_ref, w3_ref, w2_ref,
                      o_ref, lb_ref, xn_sc, cw_sc, acc_sc):
    e = pl.program_id(0)

    @pl.when(e == 0)
    def _():
        # post-attention RMSNorm + routing, computed once, cached in VMEM scratch.
        x = x_ref[...].astype(jnp.float32)                              # [T, D]
        var = jnp.mean(x * x, axis=-1, keepdims=True)
        xn = x * jax.lax.rsqrt(var + RMS_EPS) * ln_ref[...].astype(jnp.float32)
        xn_sc[...] = xn
        logits = jnp.dot(xn, gate_ref[...], preferred_element_type=jnp.float32)  # [T, E]
        lmax = jnp.max(logits, axis=-1, keepdims=True)
        pexp = jnp.exp(logits - lmax)
        w = pexp / jnp.sum(pexp, axis=-1, keepdims=True)                # router softmax

        # top-k selection: K argmax passes, tie-break by lowest expert index
        idx = jax.lax.broadcasted_iota(jnp.int32, w.shape, 1).astype(jnp.float32)
        selm = jnp.zeros_like(w)
        topsum = jnp.zeros((w.shape[0], 1), jnp.float32)
        rem = w
        for _ in range(TOP_K):
            m = jnp.max(rem, axis=-1, keepdims=True)
            first = jnp.min(jnp.where(rem >= m, idx, float(NUM_EXPERTS)),
                            axis=-1, keepdims=True)
            pick = idx == first
            selm = selm + pick.astype(jnp.float32)
            topsum = topsum + m
            rem = jnp.where(pick, -1.0, rem)
        cw = w * selm / topsum                       # renormalized top-k weights, 0 elsewhere
        for ee in range(NUM_EXPERTS):                # expert-major cache -> ref[e] slice later
            cw_sc[ee] = cw[:, ee:ee + 1]             # [T, 1]
        acc_sc[...] = jnp.zeros_like(acc_sc)

        # load-balancing loss (== load_balancing_loss_func with attention_mask=None)
        tok = jnp.sum(selm, axis=0, keepdims=True)   # [1, E] tokens routed to each expert
        prob = jnp.sum(w, axis=0, keepdims=True)     # [1, E] router prob mass per expert
        n_tok = jnp.float32(w.shape[0])
        lb_ref[...] = jnp.sum(tok * prob, axis=-1, keepdims=True) * (
            NUM_EXPERTS / (TOP_K * n_tok * n_tok))

    # per-expert SwiGLU (dense-masked MoE), accumulated in f32 VMEM scratch.
    # TODO(synk): at real token counts use a scalar-prefetch routed grouped matmul instead
    # of running every expert on every token.
    xn = xn_sc[...]
    g = jnp.dot(xn, w1_ref[...], preferred_element_type=jnp.float32)    # gate proj
    u = jnp.dot(xn, w3_ref[...], preferred_element_type=jnp.float32)    # up proj
    h = (g * jax.nn.sigmoid(g)) * u                                     # SiLU(g) * u
    y = jnp.dot(h, w2_ref[...], preferred_element_type=jnp.float32)     # down proj
    acc_sc[...] += y * cw_sc[e]                                         # direct per-expert slice

    @pl.when(e == NUM_EXPERTS - 1)
    def _():
        o_ref[...] = (x_ref[...].astype(jnp.float32) + acc_sc[...]).astype(o_ref.dtype)


def moe_block(x, params):
    return pl.pallas_call(
        _moe_block_kernel,
        out_shape=(jax.ShapeDtypeStruct((T, D), x.dtype),
                   jax.ShapeDtypeStruct((1, 1), jnp.float32)),
        grid=(NUM_EXPERTS,),
        in_specs=[
            pl.BlockSpec((T, D), lambda e: (0, 0)),                     # hidden (residual)
            pl.BlockSpec((1, D), lambda e: (0, 0)),                     # post_ln
            pl.BlockSpec((D, NUM_EXPERTS), lambda e: (0, 0)),           # router gate
            pl.BlockSpec((None, D, INTERMEDIATE), lambda e: (e, 0, 0)), # w1 (per expert)
            pl.BlockSpec((None, D, INTERMEDIATE), lambda e: (e, 0, 0)), # w3
            pl.BlockSpec((None, INTERMEDIATE, D), lambda e: (e, 0, 0)), # w2
        ],
        out_specs=(pl.BlockSpec((T, D), lambda e: (0, 0)),
                   pl.BlockSpec((1, 1), lambda e: (0, 0))),
        scratch_shapes=[pltpu.VMEM((T, D), jnp.float32),                # xn cache
                        pltpu.VMEM((NUM_EXPERTS, T, 1), jnp.float32),   # per-expert weights
                        pltpu.VMEM((T, D), jnp.float32)],               # f32 accumulator
        compiler_params=pltpu.CompilerParams(dimension_semantics=("arbitrary",)),
    )(x, params["post_ln"], params["gate"], params["w1"], params["w3"], params["w2"])


# ---------------- tiny host-side constant tables ----------------
def _rope_tables(position_ids):
    inv_freq = 1.0 / (ROPE_THETA ** (
        jnp.arange(0, HEAD_DIM, 2, dtype=jnp.float32) / HEAD_DIM))
    pos = position_ids.reshape(-1).astype(jnp.float32)                  # [T]
    freqs = pos[:, None] * inv_freq[None, :]                            # [T, Dh/2]
    emb = jnp.concatenate([freqs, freqs], axis=-1)                      # [T, Dh]
    n_rope_heads = NUM_HEADS + NUM_KV_HEADS
    return jnp.tile(jnp.cos(emb), (1, n_rope_heads)), jnp.tile(jnp.sin(emb), (1, n_rope_heads))


def _rotate_half_matrix():
    # rotate_half(x) == x @ R with R block-diagonal over the q|k head slots.
    half = HEAD_DIM // 2
    r = jnp.zeros((HEAD_DIM, HEAD_DIM), jnp.float32)
    r = r.at[half:, :half].set(-jnp.eye(half, dtype=jnp.float32))
    r = r.at[:half, half:].set(jnp.eye(half, dtype=jnp.float32))
    return jnp.kron(jnp.eye(NUM_HEADS + NUM_KV_HEADS, dtype=jnp.float32), r)


def _causal_bias():
    row = jnp.arange(S, dtype=jnp.int32)[:, None]
    col = jnp.arange(S, dtype=jnp.int32)[None, :]
    bias = jnp.where(col <= row, 0.0, NEG_INF).astype(jnp.float32)      # [S, S]
    return jnp.tile(bias, (N_REP, 1))                                   # [N_REP*S, S]


# ---------------- full layer forward ----------------
def moe_decoder_layer_pp(hidden_states, position_ids, lb_loss, params):
    Bh, Sh, Dn = hidden_states.shape
    x = hidden_states.reshape(Bh * Sh, Dn)
    cos_full, sin_full = _rope_tables(position_ids)
    bias = _causal_bias()

    # forward_attn: residual + attn(input_layernorm(x))  -- one fused kernel
    x = attn_block(x, params, cos_full, sin_full, bias)
    # forward_moe: residual + MoE(post_attention_layernorm(x)) + lb loss -- one fused kernel
    x, lb = moe_block(x, params)

    # TODO(synk): torch.utils.checkpoint and router_jitter_noise are training-only; no
    # forward-pass effect.
    return x.reshape(Bh, Sh, Dn), position_ids, lb_loss + lb[0, 0]


# ---------------- deterministic parameter init ----------------
def init_params(key):
    ks = jax.random.split(key, 8)
    s = 0.02
    wq = jax.random.normal(ks[0], (D, Q_D), jnp.float32) * s
    wk = jax.random.normal(ks[1], (D, KV_D), jnp.float32) * s
    wv = jax.random.normal(ks[2], (D, KV_D), jnp.float32) * s
    return {
        "input_ln": jnp.ones((1, D), jnp.float32),
        "post_ln": jnp.ones((1, D), jnp.float32),
        # wq/wk/wv fused into one [D, Q_D + 2*KV_D] weight -> single MXU pass per token block
        "wqkv": jnp.concatenate([wq, wk, wv], axis=1),
        "wo": jax.random.normal(ks[3], (Q_D, D), jnp.float32) * s,
        "gate": jax.random.normal(ks[4], (D, NUM_EXPERTS), jnp.float32) * s,
        "w1": jax.random.normal(ks[5], (NUM_EXPERTS, D, INTERMEDIATE), jnp.float32) * s,
        "w3": jax.random.normal(ks[6], (NUM_EXPERTS, D, INTERMEDIATE), jnp.float32) * s,
        "w2": jax.random.normal(ks[7], (NUM_EXPERTS, INTERMEDIATE, D), jnp.float32) * s,
        # constant block-diagonal rotate-half matrix (RoPE as a matmul)
        "rope_rot": _rotate_half_matrix(),
    }


if __name__ == "__main__":
    key = jax.random.PRNGKey(0)
    k_param, k_x = jax.random.split(key)
    params = init_params(k_param)
    hidden_states = jax.random.normal(k_x, (B, S, D), jnp.float32)
    position_ids = jnp.broadcast_to(jnp.arange(S, dtype=jnp.int32)[None, :], (B, S))
    lb_loss = jnp.float32(0.0)

    fwd = jax.jit(lambda h, p, l: moe_decoder_layer_pp(h, p, l, params))
    out_hidden, out_pos, out_lb = fwd(hidden_states, position_ids, lb_loss)
    jax.block_until_ready((out_hidden, out_pos, out_lb))

    assert out_hidden.shape == (B, S, D)
    assert out_pos.shape == (B, S)
    assert out_lb.shape == ()
    assert jnp.all(jnp.isfinite(out_hidden)) and jnp.isfinite(out_lb)
    print("KERNEL_OK")
</pallas_src>

<mosaic_0001>
module attributes {stable_mosaic.version = 11 : i64} {
  func.func @_moe_block_kernel(%arg0: i32, %arg1: memref<16x32xf32, #tpu.memory_space<vmem>>, %arg2: memref<1x32xf32, #tpu.memory_space<vmem>>, %arg3: memref<32x4xf32, #tpu.memory_space<vmem>>, %arg4: memref<1x32x64xf32, #tpu.memory_space<vmem>>, %arg5: memref<1x32x64xf32, #tpu.memory_space<vmem>>, %arg6: memref<1x64x32xf32, #tpu.memory_space<vmem>>, %arg7: memref<16x32xf32, #tpu.memory_space<vmem>>, %arg8: memref<1x1xf32, #tpu.memory_space<vmem>>, %arg9: memref<16x32xf32, #tpu.memory_space<vmem>>, %arg10: memref<4x16x1xf32, #tpu.memory_space<vmem>>, %arg11: memref<16x32xf32, #tpu.memory_space<vmem>>) attributes {dimension_semantics = [#tpu.dimension_semantics<arbitrary>], iteration_bounds = array<i64: 4>, scalar_prefetch = 0 : i64, scratch_operands = 3 : i64, tpu.core_type = #tpu.core_type<tc>, window_params = [{pipeline_mode = #tpu.pipeline_mode<synchronous>, transform_indices = @transform_0, window_bounds = array<i64: 16, 32>}, {pipeline_mode = #tpu.pipeline_mode<synchronous>, transform_indices = @transform_1, window_bounds = array<i64: 1, 32>}, {pipeline_mode = #tpu.pipeline_mode<synchronous>, transform_indices = @transform_2, window_bounds = array<i64: 32, 4>}, {transform_indices = @transform_3, window_bounds = array<i64: 1, 32, 64>}, {transform_indices = @transform_4, window_bounds = array<i64: 1, 32, 64>}, {transform_indices = @transform_5, window_bounds = array<i64: 1, 64, 32>}, {pipeline_mode = #tpu.pipeline_mode<synchronous>, transform_indices = @transform_6, window_bounds = array<i64: 16, 32>}, {pipeline_mode = #tpu.pipeline_mode<synchronous>, transform_indices = @transform_7, window_bounds = array<i64: 1, 1>}]} {
    %c0_i32 = arith.constant 0 : i32
    %0 = arith.cmpi eq, %arg0, %c0_i32 : i32
    %1 = arith.extui %0 : i1 to i32
    %c0_i32_0 = arith.constant 0 : i32
    %2 = arith.cmpi ne, %1, %c0_i32_0 : i32
    scf.if %2 {
      %c0_21 = arith.constant 0 : index
      %c0_22 = arith.constant 0 : index
      %31 = vector.load %arg1[%c0_21, %c0_22] : memref<16x32xf32, #tpu.memory_space<vmem>>, vector<16x32xf32>
      %32 = arith.mulf %31, %31 : vector<16x32xf32>
      %cst_23 = arith.constant dense<0.000000e+00> : vector<16xf32>
      %33 = vector.multi_reduction <add>, %32, %cst_23 [1] : vector<16x32xf32> to vector<16xf32>
      %34 = vector.shape_cast %33 : vector<16xf32> to vector<16x1xf32>
      %cst_24 = arith.constant 3.200000e+01 : f32
      %35 = vector.broadcast %cst_24 : f32 to vector<16x1xf32>
      %36 = arith.divf %34, %35 : vector<16x1xf32>
      %cst_25 = arith.constant 9.99999997E-7 : f32
      %37 = vector.broadcast %cst_25 : f32 to vector<16x1xf32>
      %38 = arith.addf %36, %37 : vector<16x1xf32>
      %39 = math.rsqrt %38 : vector<16x1xf32>
      %40 = vector.broadcast %39 : vector<16x1xf32> to vector<16x32xf32>
      %41 = arith.mulf %31, %40 : vector<16x32xf32>
      %c0_26 = arith.constant 0 : index
      %c0_27 = arith.constant 0 : index
      %42 = vector.load %arg2[%c0_26, %c0_27] : memref<1x32xf32, #tpu.memory_space<vmem>>, vector<1x32xf32>
      %43 = vector.broadcast %42 : vector<1x32xf32> to vector<16x32xf32>
      %44 = arith.mulf %41, %43 : vector<16x32xf32>
      %c0_28 = arith.constant 0 : index
      %c0_29 = arith.constant 0 : index
      %45 = vector.load %arg9[%c0_28, %c0_29] : memref<16x32xf32, #tpu.memory_space<vmem>>, vector<16x32xf32>
      tpu.vector_store %arg9[%c0_28, %c0_29], %44 {strides = array<i32>} : memref<16x32xf32, #tpu.memory_space<vmem>>, vector<16x32xf32>,
      %c0_30 = arith.constant 0 : index
      %c0_31 = arith.constant 0 : index
      %46 = vector.load %arg3[%c0_30, %c0_31] : memref<32x4xf32, #tpu.memory_space<vmem>>, vector<32x4xf32>
      %cst_32 = arith.constant dense<0.000000e+00> : vector<16x4xf32>
      %47 = tpu.matmul %44, %46, %cst_32 {dimension_numbers = #tpu.dot_dimension_numbers<[1], [0], [0], [1], [0, 0, 1, 1], [], []>} : vector<16x32xf32>, vector<32x4xf32>, vector<16x4xf32> -> vector<16x4xf32>
      %cst_33 = arith.constant dense<0xFF800000> : vector<16xf32>
      %48 = vector.multi_reduction <maximumf>, %47, %cst_33 [1] : vector<16x4xf32> to vector<16xf32>
      %49 = vector.shape_cast %48 : vector<16xf32> to vector<16x1xf32>
      %50 = vector.broadcast %49 : vector<16x1xf32> to vector<16x4xf32>
      %51 = arith.subf %47, %50 : vector<16x4xf32>
      %52 = math.exp %51 : vector<16x4xf32>
      %cst_34 = arith.constant dense<0.000000e+00> : vector<16xf32>
      %53 = vector.multi_reduction <add>, %52, %cst_34 [1] : vector<16x4xf32> to vector<16xf32>
      %54 = vector.shape_cast %53 : vector<16xf32> to vector<16x1xf32>
      %55 = vector.broadcast %54 : vector<16x1xf32> to vector<16x4xf32>
      %56 = arith.divf %52, %55 : vector<16x4xf32>
      %57 = tpu.iota {dimensions = array<i32: 1>} : vector<16x4xi32>
      %58 = arith.sitofp %57 : vector<16x4xi32> to vector<16x4xf32>
      %cst_35 = arith.constant 0.000000e+00 : f32
      %59 = vector.broadcast %cst_35 : f32 to vector<16x4xf32>
      %cst_36 = arith.constant 0.000000e+00 : f32
      %60 = vector.broadcast %cst_36 : f32 to vector<16x1xf32>
      %cst_37 = arith.constant dense<0xFF800000> : vector<16xf32>
      %61 = vector.multi_reduction <maximumf>, %56, %cst_37 [1] : vector<16x4xf32> to vector<16xf32>
      %62 = vector.shape_cast %61 : vector<16xf32> to vector<16x1xf32>
      %63 = vector.broadcast %62 : vector<16x1xf32> to vector<16x4xf32>
      %64 = arith.cmpf oge, %56, %63 : vector<16x4xf32>
      %cst_38 = arith.constant 4.000000e+00 : f32
      %65 = vector.broadcast %cst_38 : f32 to vector<16x4xf32>
      %66 = arith.select %64, %58, %65 : vector<16x4xi1>, vector<16x4xf32>
      %cst_39 = arith.constant dense<0x7F800000> : vector<16xf32>
      %67 = vector.multi_reduction <minimumf>, %66, %cst_39 [1] : vector<16x4xf32> to vector<16xf32>
      %68 = vector.shape_cast %67 : vector<16xf32> to vector<16x1xf32>
      %69 = vector.broadcast %68 : vector<16x1xf32> to vector<16x4xf32>
      %70 = arith.cmpf oeq, %58, %69 : vector<16x4xf32>
      %71 = arith.extui %70 : vector<16x4xi1> to vector<16x4xi32>
      %72 = arith.sitofp %71 : vector<16x4xi32> to vector<16x4xf32>
      %73 = arith.addf %59, %72 : vector<16x4xf32>
      %74 = arith.addf %60, %62 : vector<16x1xf32>
      %cst_40 = arith.constant -1.000000e+00 : f32
      %75 = vector.broadcast %cst_40 : f32 to vector<16x4xf32>
      %76 = arith.select %70, %75, %56 : vector<16x4xi1>, vector<16x4xf32>
      %cst_41 = arith.constant dense<0xFF800000> : vector<16xf32>
      %77 = vector.multi_reduction <maximumf>, %76, %cst_41 [1] : vector<16x4xf32> to vector<16xf32>
      %78 = vector.shape_cast %77 : vector<16xf32> to vector<16x1xf32>
      %79 = vector.broadcast %78 : vector<16x1xf32> to vector<16x4xf32>
      %80 = arith.cmpf oge, %76, %79 : vector<16x4xf32>
      %cst_42 = arith.constant 4.000000e+00 : f32
      %81 = vector.broadcast %cst_42 : f32 to vector<16x4xf32>
      %82 = arith.select %80, %58, %81 : vector<16x4xi1>, vector<16x4xf32>
      %cst_43 = arith.constant dense<0x7F800000> : vector<16xf32>
      %83 = vector.multi_reduction <minimumf>, %82, %cst_43 [1] : vector<16x4xf32> to vector<16xf32>
      %84 = vector.shape_cast %83 : vector<16xf32> to vector<16x1xf32>
      %85 = vector.broadcast %84 : vector<16x1xf32> to vector<16x4xf32>
      %86 = arith.cmpf oeq, %58, %85 : vector<16x4xf32>
      %87 = arith.extui %86 : vector<16x4xi1> to vector<16x4xi32>
      %88 = arith.sitofp %87 : vector<16x4xi32> to vector<16x4xf32>
      %89 = arith.addf %73, %88 : vector<16x4xf32>
      %90 = arith.addf %74, %78 : vector<16x1xf32>
      %91 = arith.mulf %56, %89 : vector<16x4xf32>
      %92 = vector.broadcast %90 : vector<16x1xf32> to vector<16x4xf32>
      %93 = arith.divf %91, %92 : vector<16x4xf32>
      %94 = vector.extract_strided_slice %93 {offsets = [0, 0], sizes = [16, 1], strides = [1, 1]} : vector<16x4xf32> to vector<16x1xf32>
      %c0_44 = arith.constant 0 : index
      %c0_45 = arith.constant 0 : index
      %c0_46 = arith.constant 0 : index
      %95 = vector.load %arg10[%c0_44, %c0_45, %c0_46] : memref<4x16x1xf32, #tpu.memory_space<vmem>>, vector<1x16x1xf32>
      %96 = vector.shape_cast %95 : vector<1x16x1xf32> to vector<16x1xf32>
      %97 = vector.shape_cast %94 : vector<16x1xf32> to vector<1x16x1xf32>
      tpu.vector_store %arg10[%c0_44, %c0_45, %c0_46], %97 {strides = array<i32>} : memref<4x16x1xf32, #tpu.memory_space<vmem>>, vector<1x16x1xf32>,
      %98 = vector.extract_strided_slice %93 {offsets = [0, 1], sizes = [16, 1], strides = [1, 1]} : vector<16x4xf32> to vector<16x1xf32>
      %c1 = arith.constant 1 : index
      %c0_47 = arith.constant 0 : index
      %c0_48 = arith.constant 0 : index
      %99 = vector.load %arg10[%c1, %c0_47, %c0_48] : memref<4x16x1xf32, #tpu.memory_space<vmem>>, vector<1x16x1xf32>
      %100 = vector.shape_cast %99 : vector<1x16x1xf32> to vector<16x1xf32>
      %101 = vector.shape_cast %98 : vector<16x1xf32> to vector<1x16x1xf32>
      tpu.vector_store %arg10[%c1, %c0_47, %c0_48], %101 {strides = array<i32>} : memref<4x16x1xf32, #tpu.memory_space<vmem>>, vector<1x16x1xf32>,
      %102 = vector.extract_strided_slice %93 {offsets = [0, 2], sizes = [16, 1], strides = [1, 1]} : vector<16x4xf32> to vector<16x1xf32>
      %c2 = arith.constant 2 : index
      %c0_49 = arith.constant 0 : index
      %c0_50 = arith.constant 0 : index
      %103 = vector.load %arg10[%c2, %c0_49, %c0_50] : memref<4x16x1xf32, #tpu.memory_space<vmem>>, vector<1x16x1xf32>
      %104 = vector.shape_cast %103 : vector<1x16x1xf32> to vector<16x1xf32>
      %105 = vector.shape_cast %102 : vector<16x1xf32> to vector<1x16x1xf32>
      tpu.vector_store %arg10[%c2, %c0_49, %c0_50], %105 {strides = array<i32>} : memref<4x16x1xf32, #tpu.memory_space<vmem>>, vector<1x16x1xf32>,
      %106 = vector.extract_strided_slice %93 {offsets = [0, 3], sizes = [16, 1], strides = [1, 1]} : vector<16x4xf32> to vector<16x1xf32>
      %c3 = arith.constant 3 : index
      %c0_51 = arith.constant 0 : index
      %c0_52 = arith.constant 0 : index
      %107 = vector.load %arg10[%c3, %c0_51, %c0_52] : memref<4x16x1xf32, #tpu.memory_space<vmem>>, vector<1x16x1xf32>
      %108 = vector.shape_cast %107 : vector<1x16x1xf32> to vector<16x1xf32>
      %109 = vector.shape_cast %106 : vector<16x1xf32> to vector<1x16x1xf32>
      tpu.vector_store %arg10[%c3, %c0_51, %c0_52], %109 {strides = array<i32>} : memref<4x16x1xf32, #tpu.memory_space<vmem>>, vector<1x16x1xf32>,
      %cst_53 = arith.constant 0.000000e+00 : f32
      %110 = vector.broadcast %cst_53 : f32 to vector<16x32xf32>
      %c0_54 = arith.constant 0 : index
      %c0_55 = arith.constant 0 : index
      %111 = vector.load %arg11[%c0_54, %c0_55] : memref<16x32xf32, #tpu.memory_space<vmem>>, vector<16x32xf32>
      tpu.vector_store %arg11[%c0_54, %c0_55], %110 {strides = array<i32>} : memref<16x32xf32, #tpu.memory_space<vmem>>, vector<16x32xf32>,
      %cst_56 = arith.constant dense<0.000000e+00> : vector<4xf32>
      %112 = vector.multi_reduction <add>, %89, %cst_56 [0] : vector<16x4xf32> to vector<4xf32>
      %113 = vector.shape_cast %112 : vector<4xf32> to vector<1x4xf32>
      %cst_57 = arith.constant dense<0.000000e+00> : vector<4xf32>
      %114 = vector.multi_reduction <add>, %56, %cst_57 [0] : vector<16x4xf32> to vector<4xf32>
      %115 = vector.shape_cast %114 : vector<4xf32> to vector<1x4xf32>
      %116 = arith.mulf %113, %115 : vector<1x4xf32>
      %cst_58 = arith.constant dense<0.000000e+00> : vector<1xf32>
      %117 = vector.multi_reduction <add>, %116, %cst_58 [1] : vector<1x4xf32> to vector<1xf32>
      %118 = vector.shape_cast %117 : vector<1xf32> to vector<1x1xf32>
      %cst_59 = arith.constant 2.000000e+00 : f32
      %cst_60 = arith.constant 1.600000e+01 : f32
      %119 = arith.mulf %cst_59, %cst_60 : f32
      %cst_61 = arith.constant 1.600000e+01 : f32
      %120 = arith.mulf %119, %cst_61 : f32
      %cst_62 = arith.constant 4.000000e+00 : f32
      %121 = arith.divf %cst_62, %120 : f32
      %122 = vector.broadcast %121 : f32 to vector<1x1xf32>
      %123 = arith.mulf %118, %122 : vector<1x1xf32>
      %c0_63 = arith.constant 0 : index
      %c0_64 = arith.constant 0 : index
      %124 = vector.load %arg8[%c0_63, %c0_64] : memref<1x1xf32, #tpu.memory_space<vmem>>, vector<1x1xf32>
      tpu.vector_store %arg8[%c0_63, %c0_64], %123 {strides = array<i32>} : memref<1x1xf32, #tpu.memory_space<vmem>>, vector<1x1xf32>,
    } else {
    }
    %c0 = arith.constant 0 : index
    %c0_1 = arith.constant 0 : index
    %3 = vector.load %arg9[%c0, %c0_1] : memref<16x32xf32, #tpu.memory_space<vmem>>, vector<16x32xf32>
    %c0_2 = arith.constant 0 : index
    %c0_3 = arith.constant 0 : index
    %c0_4 = arith.constant 0 : index
    %4 = vector.load %arg4[%c0_2, %c0_3, %c0_4] : memref<1x32x64xf32, #tpu.memory_space<vmem>>, vector<1x32x64xf32>
    %5 = vector.shape_cast %4 : vector<1x32x64xf32> to vector<32x64xf32>
    %cst = arith.constant dense<0.000000e+00> : vector<16x64xf32>
    %6 = tpu.matmul %3, %5, %cst {dimension_numbers = #tpu.dot_dimension_numbers<[1], [0], [0], [1], [0, 0, 1, 1], [], []>} : vector<16x32xf32>, vector<32x64xf32>, vector<16x64xf32> -> vector<16x64xf32>
    %c0_5 = arith.constant 0 : index
    %c0_6 = arith.constant 0 : index
    %c0_7 = arith.constant 0 : index
    %7 = vector.load %arg5[%c0_5, %c0_6, %c0_7] : memref<1x32x64xf32, #tpu.memory_space<vmem>>, vector<1x32x64xf32>
    %8 = vector.shape_cast %7 : vector<1x32x64xf32> to vector<32x64xf32>
    %cst_8 = arith.constant dense<0.000000e+00> : vector<16x64xf32>
    %9 = tpu.matmul %3, %8, %cst_8 {dimension_numbers = #tpu.dot_dimension_numbers<[1], [0], [0], [1], [0, 0, 1, 1], [], []>} : vector<16x32xf32>, vector<32x64xf32>, vector<16x64xf32> -> vector<16x64xf32>
    %10 = arith.negf %6 : vector<16x64xf32>
    %11 = math.exp %10 : vector<16x64xf32>
    %cst_9 = arith.constant 1.000000e+00 : f32
    %12 = vector.broadcast %cst_9 : f32 to vector<16x64xf32>
    %13 = arith.addf %12, %11 : vector<16x64xf32>
    %14 = arith.divf %12, %13 : vector<16x64xf32>
    %15 = arith.mulf %6, %14 : vector<16x64xf32>
    %16 = arith.mulf %15, %9 : vector<16x64xf32>
    %c0_10 = arith.constant 0 : index
    %c0_11 = arith.constant 0 : index
    %c0_12 = arith.constant 0 : index
    %17 = vector.load %arg6[%c0_10, %c0_11, %c0_12] : memref<1x64x32xf32, #tpu.memory_space<vmem>>, vector<1x64x32xf32>
    %18 = vector.shape_cast %17 : vector<1x64x32xf32> to vector<64x32xf32>
    %cst_13 = arith.constant dense<0.000000e+00> : vector<16x32xf32>
    %19 = tpu.matmul %16, %18, %cst_13 {dimension_numbers = #tpu.dot_dimension_numbers<[1], [0], [0], [1], [0, 0, 1, 1], [], []>} : vector<16x64xf32>, vector<64x32xf32>, vector<16x32xf32> -> vector<16x32xf32>
    %c0_14 = arith.constant 0 : index
    %c0_15 = arith.constant 0 : index
    %20 = vector.load %arg11[%c0_14, %c0_15] : memref<16x32xf32, #tpu.memory_space<vmem>>, vector<16x32xf32>
    %21 = arith.index_cast %arg0 : i32 to index
    %c0_16 = arith.constant 0 : index
    %c0_17 = arith.constant 0 : index
    %22 = vector.load %arg10[%21, %c0_16, %c0_17] : memref<4x16x1xf32, #tpu.memory_space<vmem>>, vector<1x16x1xf32>
    %23 = vector.shape_cast %22 : vector<1x16x1xf32> to vector<16x1xf32>
    %24 = vector.broadcast %23 : vector<16x1xf32> to vector<16x32xf32>
    %25 = arith.mulf %19, %24 : vector<16x32xf32>
    %26 = arith.addf %20, %25 : vector<16x32xf32>
    %c0_18 = arith.constant 0 : index
    %c0_19 = arith.constant 0 : index
    %27 = vector.load %arg11[%c0_18, %c0_19] : memref<16x32xf32, #tpu.memory_space<vmem>>, vector<16x32xf32>
    tpu.vector_store %arg11[%c0_18, %c0_19], %26 {strides = array<i32>} : memref<16x32xf32, #tpu.memory_space<vmem>>, vector<16x32xf32>,
    %c3_i32 = arith.constant 3 : i32
    %28 = arith.cmpi eq, %arg0, %c3_i32 : i32
    %29 = arith.extui %28 : i1 to i32
    %c0_i32_20 = arith.constant 0 : i32
    %30 = arith.cmpi ne, %29, %c0_i32_20 : i32
    scf.if %30 {
      %c0_21 = arith.constant 0 : index
      %c0_22 = arith.constant 0 : index
      %31 = vector.load %arg1[%c0_21, %c0_22] : memref<16x32xf32, #tpu.memory_space<vmem>>, vector<16x32xf32>
      %c0_23 = arith.constant 0 : index
      %c0_24 = arith.constant 0 : index
      %32 = vector.load %arg11[%c0_23, %c0_24] : memref<16x32xf32, #tpu.memory_space<vmem>>, vector<16x32xf32>
      %33 = arith.addf %31, %32 : vector<16x32xf32>
      %c0_25 = arith.constant 0 : index
      %c0_26 = arith.constant 0 : index
      %34 = vector.load %arg7[%c0_25, %c0_26] : memref<16x32xf32, #tpu.memory_space<vmem>>, vector<16x32xf32>
      tpu.vector_store %arg7[%c0_25, %c0_26], %33 {strides = array<i32>} : memref<16x32xf32, #tpu.memory_space<vmem>>, vector<16x32xf32>,
    } else {
    }
    return
  }
  func.func @transform_0(%arg0: i32) -> (i32, i32) {
    %c0_i32 = arith.constant 0 : i32
    %c0_i32_0 = arith.constant 0 : i32
    %c0_i32_1 = arith.constant 0 : i32
    return %c0_i32, %c0_i32_0 : i32, i32
  }
  func.func @transform_1(%arg0: i32) -> (i32, i32) {
    %c0_i32 = arith.constant 0 : i32
    %c0_i32_0 = arith.constant 0 : i32
    %c0_i32_1 = arith.constant 0 : i32
    return %c0_i32, %c0_i32_0 : i32, i32
  }
  func.func @transform_2(%arg0: i32) -> (i32, i32) {
    %c0_i32 = arith.constant 0 : i32
    %c0_i32_0 = arith.constant 0 : i32
    %c0_i32_1 = arith.constant 0 : i32
    return %c0_i32, %c0_i32_0 : i32, i32
  }
  func.func @transform_3(%arg0: i32) -> (i32, i32, i32) {
    %c0_i32 = arith.constant 0 : i32
    %c0_i32_0 = arith.constant 0 : i32
    %c0_i32_1 = arith.constant 0 : i32
    return %arg0, %c0_i32, %c0_i32_0 : i32, i32, i32
  }
  func.func @transform_4(%arg0: i32) -> (i32, i32, i32) {
    %c0_i32 = arith.constant 0 : i32
    %c0_i32_0 = arith.constant 0 : i32
    %c0_i32_1 = arith.constant 0 : i32
    return %arg0, %c0_i32, %c0_i32_0 : i32, i32, i32
  }
  func.func @transform_5(%arg0: i32) -> (i32, i32, i32) {
    %c0_i32 = arith.constant 0 : i32
    %c0_i32_0 = arith.constant 0 : i32
    %c0_i32_1 = arith.constant 0 : i32
    return %arg0, %c0_i32, %c0_i32_0 : i32, i32, i32
  }
  func.func @transform_6(%arg0: i32) -> (i32, i32) {
    %c0_i32 = arith.constant 0 : i32
    %c0_i32_0 = arith.constant 0 : i32
    %c0_i32_1 = arith.constant 0 : i32
    return %c0_i32, %c0_i32_0 : i32, i32
  }
  func.func @transform_7(%arg0: i32) -> (i32, i32) {
    %c0_i32 = arith.constant 0 : i32
    %c0_i32_0 = arith.constant 0 : i32
    %c0_i32_1 = arith.constant 0 : i32
    return %c0_i32, %c0_i32_0 : i32, i32
  }
}

module attributes {stable_mosaic.version = 11 : i64} {
  func.func @_attn_block_kernel(%arg0: i32, %arg1: memref<8x32xf32, #tpu.memory_space<vmem>>, %arg2: memref<1x32xf32, #tpu.memory_space<vmem>>, %arg3: memref<32x64xf32, #tpu.memory_space<vmem>>, %arg4: memref<32x32xf32, #tpu.memory_space<vmem>>, %arg5: memref<8x48xf32, #tpu.memory_space<vmem>>, %arg6: memref<8x48xf32, #tpu.memory_space<vmem>>, %arg7: memref<48x48xf32, #tpu.memory_space<vmem>>, %arg8: memref<16x8xf32, #tpu.memory_space<vmem>>, %arg9: memref<8x32xf32, #tpu.memory_space<vmem>>) attributes {dimension_semantics = [#tpu.dimension_semantics<parallel>], iteration_bounds = array<i64: 2>, scalar_prefetch = 0 : i64, scratch_operands = 0 : i64, tpu.core_type = #tpu.core_type<tc>, window_params = [{transform_indices = @transform_0, window_bounds = array<i64: 8, 32>}, {pipeline_mode = #tpu.pipeline_mode<synchronous>, transform_indices = @transform_1, window_bounds = array<i64: 1, 32>}, {pipeline_mode = #tpu.pipeline_mode<synchronous>, transform_indices = @transform_2, window_bounds = array<i64: 32, 64>}, {pipeline_mode = #tpu.pipeline_mode<synchronous>, transform_indices = @transform_3, window_bounds = array<i64: 32, 32>}, {transform_indices = @transform_4, window_bounds = array<i64: 8, 48>}, {transform_indices = @transform_5, window_bounds = array<i64: 8, 48>}, {pipeline_mode = #tpu.pipeline_mode<synchronous>, transform_indices = @transform_6, window_bounds = array<i64: 48, 48>}, {pipeline_mode = #tpu.pipeline_mode<synchronous>, transform_indices = @transform_7, window_bounds = array<i64: 16, 8>}, {transform_indices = @transform_8, window_bounds = array<i64: 8, 32>}]} {
    %c0 = arith.constant 0 : index
    %c0_0 = arith.constant 0 : index
    %0 = vector.load %arg1[%c0, %c0_0] : memref<8x32xf32, #tpu.memory_space<vmem>>, vector<8x32xf32>
    %1 = arith.mulf %0, %0 : vector<8x32xf32>
    %cst = arith.constant dense<0.000000e+00> : vector<8xf32>
    %2 = vector.multi_reduction <add>, %1, %cst [1] : vector<8x32xf32> to vector<8xf32>
    %3 = vector.shape_cast %2 : vector<8xf32> to vector<8x1xf32>
    %cst_1 = arith.constant 3.200000e+01 : f32
    %4 = vector.broadcast %cst_1 : f32 to vector<8x1xf32>
    %5 = arith.divf %3, %4 : vector<8x1xf32>
    %cst_2 = arith.constant 9.99999997E-7 : f32
    %6 = vector.broadcast %cst_2 : f32 to vector<8x1xf32>
    %7 = arith.addf %5, %6 : vector<8x1xf32>
    %8 = math.rsqrt %7 : vector<8x1xf32>
    %9 = vector.broadcast %8 : vector<8x1xf32> to vector<8x32xf32>
    %10 = arith.mulf %0, %9 : vector<8x32xf32>
    %c0_3 = arith.constant 0 : index
    %c0_4 = arith.constant 0 : index
    %11 = vector.load %arg2[%c0_3, %c0_4] : memref<1x32xf32, #tpu.memory_space<vmem>>, vector<1x32xf32>
    %12 = vector.broadcast %11 : vector<1x32xf32> to vector<8x32xf32>
    %13 = arith.mulf %10, %12 : vector<8x32xf32>
    %c0_5 = arith.constant 0 : index
    %c0_6 = arith.constant 0 : index
    %14 = vector.load %arg3[%c0_5, %c0_6] : memref<32x64xf32, #tpu.memory_space<vmem>>, vector<32x64xf32>
    %cst_7 = arith.constant dense<0.000000e+00> : vector<8x64xf32>
    %15 = tpu.matmul %13, %14, %cst_7 {dimension_numbers = #tpu.dot_dimension_numbers<[1], [0], [0], [1], [0, 0, 1, 1], [], []>} : vector<8x32xf32>, vector<32x64xf32>, vector<8x64xf32> -> vector<8x64xf32>
    %16 = vector.extract_strided_slice %15 {offsets = [0, 0], sizes = [8, 48], strides = [1, 1]} : vector<8x64xf32> to vector<8x48xf32>
    %c0_8 = arith.constant 0 : index
    %c0_9 = arith.constant 0 : index
    %17 = vector.load %arg5[%c0_8, %c0_9] : memref<8x48xf32, #tpu.memory_space<vmem>>, vector<8x48xf32>
    %18 = arith.mulf %16, %17 : vector<8x48xf32>
    %c0_10 = arith.constant 0 : index
    %c0_11 = arith.constant 0 : index
    %19 = vector.load %arg7[%c0_10, %c0_11] : memref<48x48xf32, #tpu.memory_space<vmem>>, vector<48x48xf32>
    %cst_12 = arith.constant dense<0.000000e+00> : vector<8x48xf32>
    %20 = tpu.matmul %16, %19, %cst_12 {dimension_numbers = #tpu.dot_dimension_numbers<[1], [0], [0], [1], [0, 0, 1, 1], [], []>} : vector<8x48xf32>, vector<48x48xf32>, vector<8x48xf32> -> vector<8x48xf32>
    %c0_13 = arith.constant 0 : index
    %c0_14 = arith.constant 0 : index
    %21 = vector.load %arg6[%c0_13, %c0_14] : memref<8x48xf32, #tpu.memory_space<vmem>>, vector<8x48xf32>
    %22 = arith.mulf %20, %21 : vector<8x48xf32>
    %23 = arith.addf %18, %22 : vector<8x48xf32>
    %cst_15 = arith.constant 8.000000e+00 : f32
    %24 = math.sqrt %cst_15 : f32
    %cst_16 = arith.constant 1.000000e+00 : f32
    %25 = arith.divf %cst_16, %24 : f32
    %c0_17 = arith.constant 0 : index
    %c0_18 = arith.constant 0 : index
    %26 = vector.load %arg8[%c0_17, %c0_18] : memref<16x8xf32, #tpu.memory_space<vmem>>, vector<16x8xf32>
    %27 = vector.extract_strided_slice %23 {offsets = [0, 32], sizes = [8, 8], strides = [1, 1]} : vector<8x48xf32> to vector<8x8xf32>
    %28 = vector.extract_strided_slice %15 {offsets = [0, 48], sizes = [8, 8], strides = [1, 1]} : vector<8x64xf32> to vector<8x8xf32>
    %29 = vector.extract_strided_slice %23 {offsets = [0, 0], sizes = [8, 8], strides = [1, 1]} : vector<8x48xf32> to vector<8x8xf32>
    %30 = vector.extract_strided_slice %23 {offsets = [0, 8], sizes = [8, 8], strides = [1, 1]} : vector<8x48xf32> to vector<8x8xf32>
    %31 = tpu.concatenate %29, %30 in 0 : vector<8x8xf32>, vector<8x8xf32> -> vector<16x8xf32>
    %cst_19 = arith.constant dense<0.000000e+00> : vector<16x8xf32>
    %32 = tpu.matmul %31, %27, %cst_19 {dimension_numbers = #tpu.dot_dimension_numbers<[1], [1], [0], [0], [0, 0, 1, 0], [], []>} : vector<16x8xf32>, vector<8x8xf32>, vector<16x8xf32> -> vector<16x8xf32>
    %33 = vector.broadcast %25 : f32 to vector<16x8xf32>
    %34 = arith.mulf %32, %33 : vector<16x8xf32>
    %35 = arith.addf %34, %26 : vector<16x8xf32>
    %cst_20 = arith.constant dense<0xFF800000> : vector<16xf32>
    %36 = vector.multi_reduction <maximumf>, %35, %cst_20 [1] : vector<16x8xf32> to vector<16xf32>
    %37 = vector.shape_cast %36 : vector<16xf32> to vector<16x1xf32>
    %38 = vector.broadcast %37 : vector<16x1xf32> to vector<16x8xf32>
    %39 = arith.subf %35, %38 : vector<16x8xf32>
    %40 = math.exp %39 : vector<16x8xf32>
    %cst_21 = arith.constant dense<0.000000e+00> : vector<16xf32>
    %41 = vector.multi_reduction <add>, %40, %cst_21 [1] : vector<16x8xf32> to vector<16xf32>
    %42 = vector.shape_cast %41 : vector<16xf32> to vector<16x1xf32>
    %43 = tpu.reciprocal %42 {approx = true} : vector<16x1xf32> -> vector<16x1xf32>
    %44 = vector.broadcast %43 : vector<16x1xf32> to vector<16x8xf32>
    %45 = arith.mulf %40, %44 : vector<16x8xf32>
    %cst_22 = arith.constant dense<0.000000e+00> : vector<16x8xf32>
    %46 = tpu.matmul %45, %28, %cst_22 {dimension_numbers = #tpu.dot_dimension_numbers<[1], [0], [0], [1], [0, 0, 1, 1], [], []>} : vector<16x8xf32>, vector<8x8xf32>, vector<16x8xf32> -> vector<16x8xf32>
    %47 = vector.extract_strided_slice %46 {offsets = [0, 0], sizes = [8, 8], strides = [1, 1]} : vector<16x8xf32> to vector<8x8xf32>
    %48 = vector.extract_strided_slice %46 {offsets = [8, 0], sizes = [8, 8], strides = [1, 1]} : vector<16x8xf32> to vector<8x8xf32>
    %49 = vector.extract_strided_slice %23 {offsets = [0, 40], sizes = [8, 8], strides = [1, 1]} : vector<8x48xf32> to vector<8x8xf32>
    %50 = vector.extract_strided_slice %15 {offsets = [0, 56], sizes = [8, 8], strides = [1, 1]} : vector<8x64xf32> to vector<8x8xf32>
    %51 = vector.extract_strided_slice %23 {offsets = [0, 16], sizes = [8, 8], strides = [1, 1]} : vector<8x48xf32> to vector<8x8xf32>
    %52 = vector.extract_strided_slice %23 {offsets = [0, 24], sizes = [8, 8], strides = [1, 1]} : vector<8x48xf32> to vector<8x8xf32>
    %53 = tpu.concatenate %51, %52 in 0 : vector<8x8xf32>, vector<8x8xf32> -> vector<16x8xf32>
    %cst_23 = arith.constant dense<0.000000e+00> : vector<16x8xf32>
    %54 = tpu.matmul %53, %49, %cst_23 {dimension_numbers = #tpu.dot_dimension_numbers<[1], [1], [0], [0], [0, 0, 1, 0], [], []>} : vector<16x8xf32>, vector<8x8xf32>, vector<16x8xf32> -> vector<16x8xf32>
    %55 = vector.broadcast %25 : f32 to vector<16x8xf32>
    %56 = arith.mulf %54, %55 : vector<16x8xf32>
    %57 = arith.addf %56, %26 : vector<16x8xf32>
    %cst_24 = arith.constant dense<0xFF800000> : vector<16xf32>
    %58 = vector.multi_reduction <maximumf>, %57, %cst_24 [1] : vector<16x8xf32> to vector<16xf32>
    %59 = vector.shape_cast %58 : vector<16xf32> to vector<16x1xf32>
    %60 = vector.broadcast %59 : vector<16x1xf32> to vector<16x8xf32>
    %61 = arith.subf %57, %60 : vector<16x8xf32>
    %62 = math.exp %61 : vector<16x8xf32>
    %cst_25 = arith.constant dense<0.000000e+00> : vector<16xf32>
    %63 = vector.multi_reduction <add>, %62, %cst_25 [1] : vector<16x8xf32> to vector<16xf32>
    %64 = vector.shape_cast %63 : vector<16xf32> to vector<16x1xf32>
    %65 = tpu.reciprocal %64 {approx = true} : vector<16x1xf32> -> vector<16x1xf32>
    %66 = vector.broadcast %65 : vector<16x1xf32> to vector<16x8xf32>
    %67 = arith.mulf %62, %66 : vector<16x8xf32>
    %cst_26 = arith.constant dense<0.000000e+00> : vector<16x8xf32>
    %68 = tpu.matmul %67, %50, %cst_26 {dimension_numbers = #tpu.dot_dimension_numbers<[1], [0], [0], [1], [0, 0, 1, 1], [], []>} : vector<16x8xf32>, vector<8x8xf32>, vector<16x8xf32> -> vector<16x8xf32>
    %69 = vector.extract_strided_slice %68 {offsets = [0, 0], sizes = [8, 8], strides = [1, 1]} : vector<16x8xf32> to vector<8x8xf32>
    %70 = vector.extract_strided_slice %68 {offsets = [8, 0], sizes = [8, 8], strides = [1, 1]} : vector<16x8xf32> to vector<8x8xf32>
    %71 = tpu.concatenate %47, %48, %69, %70 in 1 : vector<8x8xf32>, vector<8x8xf32>, vector<8x8xf32>, vector<8x8xf32> -> vector<8x32xf32>
    %c0_27 = arith.constant 0 : index
    %c0_28 = arith.constant 0 : index
    %72 = vector.load %arg4[%c0_27, %c0_28] : memref<32x32xf32, #tpu.memory_space<vmem>>, vector<32x32xf32>
    %cst_29 = arith.constant dense<0.000000e+00> : vector<8x32xf32>
    %73 = tpu.matmul %71, %72, %cst_29 {dimension_numbers = #tpu.dot_dimension_numbers<[1], [0], [0], [1], [0, 0, 1, 1], [], []>} : vector<8x32xf32>, vector<32x32xf32>, vector<8x32xf32> -> vector<8x32xf32>
    %74 = arith.addf %73, %0 : vector<8x32xf32>
    %c0_30 = arith.constant 0 : index
    %c0_31 = arith.constant 0 : index
    %75 = vector.load %arg9[%c0_30, %c0_31] : memref<8x32xf32, #tpu.memory_space<vmem>>, vector<8x32xf32>
    tpu.vector_store %arg9[%c0_30, %c0_31], %74 {strides = array<i32>} : memref<8x32xf32, #tpu.memory_space<vmem>>, vector<8x32xf32>,
    return
  }
  func.func @transform_0(%arg0: i32) -> (i32, i32) {
    %c0_i32 = arith.constant 0 : i32
    %c0_i32_0 = arith.constant 0 : i32
    return %arg0, %c0_i32 : i32, i32
  }
  func.func @transform_1(%arg0: i32) -> (i32, i32) {
    %c0_i32 = arith.constant 0 : i32
    %c0_i32_0 = arith.constant 0 : i32
    %c0_i32_1 = arith.constant 0 : i32
    return %c0_i32, %c0_i32_0 : i32, i32
  }
  func.func @transform_2(%arg0: i32) -> (i32, i32) {
    %c0_i32 = arith.constant 0 : i32
    %c0_i32_0 = arith.constant 0 : i32
    %c0_i32_1 = arith.constant 0 : i32
    return %c0_i32, %c0_i32_0 : i32, i32
  }
  func.func @transform_3(%arg0: i32) -> (i32, i32) {
    %c0_i32 = arith.constant 0 : i32
    %c0_i32_0 = arith.constant 0 : i32
    %c0_i32_1 = arith.constant 0 : i32
    return %c0_i32, %c0_i32_0 : i32, i32
  }
  func.func @transform_4(%arg0: i32) -> (i32, i32) {
    %c0_i32 = arith.constant 0 : i32
    %c0_i32_0 = arith.constant 0 : i32
    return %arg0, %c0_i32 : i32, i32
  }
  func.func @transform_5(%arg0: i32) -> (i32, i32) {
    %c0_i32 = arith.constant 0 : i32
    %c0_i32_0 = arith.constant 0 : i32
    return %arg0, %c0_i32 : i32, i32
  }
  func.func @transform_6(%arg0: i32) -> (i32, i32) {
    %c0_i32 = arith.constant 0 : i32
    %c0_i32_0 = arith.constant 0 : i32
    %c0_i32_1 = arith.constant 0 : i32
    return %c0_i32, %c0_i32_0 : i32, i32
  }
  func.func @transform_7(%arg0: i32) -> (i32, i32) {
    %c0_i32 = arith.constant 0 : i32
    %c0_i32_0 = arith.constant 0 : i32
    %c0_i32_1 = arith.constant 0 : i32
    return %c0_i32, %c0_i32_0 : i32, i32
  }
  func.func @transform_8(%arg0: i32) -> (i32, i32) {
    %c0_i32 = arith.constant 0 : i32
    %c0_i32_0 = arith.constant 0 : i32
    return %arg0, %c0_i32 : i32, i32
  }
}

</mosaic_0001>

<bundles_post_ra>
// kernel: _lambda_.3
= control target key start
LH: loop header
LB: loop body
LE: loop exit
PB: predicated region body
PF: predicated region fallthrough
CT: control target
= control target key end

     0   :  { %13 = vsyncpa [#allocation6], 0  ;;  %s1497_s0 = inlined_call_operand.vmem [shape: f32[16,32], index: 0, kind: input, shape index: {}]   ;;  %s1498_s1 = inlined_call_operand.vmem [shape: f32[1,32], index: 1, kind: input, shape index: {}]   ;;  %s1499_s2 = inlined_call_operand.hbm [shape: f32[32,4], index: 2, kind: input, shape index: {}]   ;;  %s1500_s3 = inlined_call_operand.vmem [shape: f32[4,32,64], index: 3, kind: input, shape index: {}]   ;;  %s1501_s4 = inlined_call_operand.vmem [shape: f32[4,32,64], index: 4, kind: input, shape index: {}]   ;;  %s1502_s5 = inlined_call_operand.vmem [shape: f32[4,64,32], index: 5, kind: input, shape index: {}]   ;;  %s1503_s6 = inlined_call_operand.hbm [shape: f32[16,32], index: 6, kind: output, shape index: {0}]   ;;  %s1504_s7 = inlined_call_operand.hbm [shape: f32[1,1], index: 7, kind: output, shape index: {1}]  }
   0x1   :  { %14 = vsyncpa [#allocation7], 0 }
   0x2   :  { %15 = vsyncpa [#allocation10], 0  ;;  %s1331_s24 = smov 0  }
   0x3 LB: > { %s1337_s25 = sadd.s32 4294967295, %s1277_s24   ;;  %p1000_p0 = scmp.ge.s32.totalorder %s1277_s24, 1  ;;  %s1277_s24 = sphi %s1331_s24, %s21_s24  }
   0x4   : > { %p209_p1 = scmp.lt.s32.totalorder %s1277_s24, 5  ;;  %s1279_s26 = smov [#allocation5]  }
   0x5   : > { %s227_s27 = sshll.u32 %s1279_s26, 4  ;;  %p1134_p4 = scmp.eq.s32.totalorder %s1337_s25, 0  ;;  %s228_s27 = int_to_ptr.vmem [resolvable:$true] %s227_s27 }
   0x6   : > { %p1342_p3 = pnand %p1000_p0, %p209_p1  ;;  %s1196_s29 = scalar_lea.vmem %s228_s27, 512 }
   0x7   : > { %p1197_p8 = scmp.ne.s32.totalorder %s228_s27, %s1196_s29  ;;  %p1204_p11 = scmp.lt.s32.totalorder %s228_s27, %s228_s27 }
   0x8   : > { %p1130_p5 = pneg %p1342_p3  ;;  %p1205_p12 = scmp.lt.s32.totalorder %s1196_s29, %s1196_s29 }
   0xa   : > { %p1131_p6 = pnand %p1134_p4, %p1130_p5  ;;  %p1206_p13 = por %p1205_p12, %p1204_p11 }
   0xc   : > { %p1187_p7 = pneg %p1131_p6 }
   0xe   : > { %p1199_p9 = pnand %p1197_p8, %p1187_p7 }
  0x10   : > { %p1200_p10 = pneg %p1199_p9 }
  0x12   : > { %p1207_p2 = pnand %p1206_p13, %p1200_p10 }
  0x14   : > { %1210 = shalt.err (!%p1207_p2)
}
  0x15   : > { %s1280_s30 = smov 128   ;;  %s1281_s8 = smov 8  }
  0x16   : > { %1133 = dma.hbm_to_vmem [thread:$0]  (!%p1131_p6), %s1499_s2, 512, %s228_s27, [#allocation6], %s1280_s30, %s1280_s30, %s1281_s8  }
  0x17   : > { %267 = sbr.rel (%p1342_p3) target bundleno = 1942 (0x796), region = 44 }
  0x1c   : > { %1264 = dma.done.wait (%p1134_p4), [#allocation6], 512  }
  0x1d   : > { %1266 = vsyncadd (%p1134_p4), [#allocation6], 4294966784  ;;  %p304_p0 = scmp.lt.s32.totalorder %s1337_s25, 3  ;;  %p1506_p1 = scmp.ne.s32.totalorder %s1337_s25, 0 }
  0x1e   : > { %s1283_s8 = smov (!%p1506_p1), 126   ;;  %s1284_s9 = smov (!%p1506_p1), 127  }
  0x1f   : > { %s305_s11 = scalar_select %p304_p0, %s1337_s25, 3 }
  0x20   : > { %322 = sbr.rel (%p1506_p1) target bundleno = 1460 (0x5b4), region = 52  ;;  %s1285_s10 = smov (!%p1506_p1), 125  }
  0x21   : > { %s1035_s12 = sshll.u32 %s305_s11, 5  ;;  %s1037_s13 = sshll.u32 %s305_s11, 6 }
  0x22   : > { %s1365_s16 = scalar_lea.vmem %s1500_s3, %s1035_s12  ;;  %s1370_s19 = scalar_lea.vmem %s1501_s4, %s1035_s12 }
  0x23   : > { %s1375_s22 = scalar_lea.vmem %s1502_s5, %s1037_s13 }
  0x25   : > { %v323_v0 = vld [vmem:[%s1497_s0] sm:$0xff]  ;;  %vm327_vm0 = vcmask 261120   ;;  %v324_v1 = vld [vmem:[%s1497_s0 + $0x8] sm:$0xff]  ;;  %v357_v6 = vld [vmem:[#allocation5 + $0x18] sm:$0xff]  ;;  %vm439_vm1 = vcmask 31744   ;;  %v1282_v45 = vmov 0.0   ;;  %v462_v46 = vlaneseq }
  0x26   : > { %v325_v2 = vmul.f32 %v323_v0, %v323_v0  ;;  %v326_v3 = vmul.f32 %v324_v1, %v324_v1  ;;  %v356_v7 = vld [vmem:[#allocation5 + $0x10] sm:$0xff]  ;;  %1066 = vmatprep.subr.mxu0 %v357_v6  ;;  %v355_v8 = vld [vmem:[#allocation5 + $0x8] sm:$0xff]  ;;  %v354_v9 = vld [vmem:[#allocation5] sm:$0xff]  ;;  %557 = vst.msk [vmem:[#allocation4] sm:$0xff] %vm327_vm0, %v1282_v45  ;;  %vm525_vm10 = vcmask 7168   ;;  %vm582_vm11 = vcmask 0  }
  0x27   : > { %1067 = vmatpush3.msra.mxu0 %v357_v6  ;;  %v1012_v17 = vld [vmem:[%s1498_s1] ss:$0 sm:$0xff]  ;;  %558 = vst.msk [vmem:[#allocation4 + $0x8] sm:$0xff] %vm327_vm0, %v1282_v45  ;;  %v463_v47 = vand.u32 127, %v462_v46 }
  0x28   : > { %v328_v4 = vsel %vm327_vm0, %v325_v2, 0.0  ;;  %v331_v5 = vsel %vm327_vm0, %v326_v3, 0.0  ;;  %1068 = vmatprep.subr.mxu0 %v356_v7 }
  0x29   : > { %329 = vadd.xlane.f32.xlu0 %v328_v4  ;;  %1069 = vmatpush3.msra.mxu0 %v356_v7  ;;  %v464_v48 = vcvt.s32.f32 %v463_v47 }
  0x2a   : > { %1070 = vmatprep.subr.mxu0 %v355_v8 }
  0x2b   : > { %1071 = vmatpush3.msra.mxu0 %v355_v8 }
  0x2c   : > { %1072 = vmatprep.subr.mxu0 %v354_v9 }
  0x2d   : > { %332 = vadd.xlane.f32.xlu0 %v331_v5  ;;  %1073 = vmatpush3.msra.mxu0 %v354_v9 }
  0xb2   : > { %v330_v10 = vpop.xlane.xlu0 %329 }
  0xb3   : > { %v335_v11 = vmul.f32 0.03125, %v330_v10 }
  0xb5   : > { %v337_v12 = vadd.f32 1e-06, %v335_v11 }
  0xb6   : > { %v333_v13 = vpop.xlane.xlu0 %332 }
  0xb7   : > { %1160 = vrsqrt.f32 %v337_v12  ;;  %v336_v14 = vmul.f32 0.03125, %v333_v13 }
  0xb9   : > { %v338_v15 = vadd.f32 1e-06, %v336_v14 }
  0xbb   : > { %1162 = vrsqrt.f32 %v338_v15 }
  0xc4   : > { %v1161_v16 = vpop.eup %1160 }
  0xc5   : > { %v341_v18 = vmul.f32 %v1161_v16, %v323_v0 }
  0xc7   : > { %v350_v19 = vmul.f32 %v1012_v17, %v341_v18 }
  0xc8   : > { %v1163_v20 = vpop.eup %1162 }
  0xc9   : > { %v342_v21 = vmul.f32 %v1163_v20, %v324_v1  ;;  %352 = vst.msk [vmem:[#allocation2] sm:$0xff] %vm327_vm0, %v350_v19  ;;  %1074 = vmatprep.mubr.msk.f32.mxu0 %vm327_vm0, %v350_v19 }
  0xcb   : > { %v351_v22 = vmul.f32 %v1012_v17, %v342_v21 }
  0xcd   : > { %353 = vst.msk [vmem:[#allocation2 + $0x8] sm:$0xff] %vm327_vm0, %v351_v22  ;;  %1075 = vmatmul.mubr.msk.f32.vlgmr.msra.gmra.mxu0 %vm327_vm0, %v351_v22 }
 0x18d   : > { %v1076_v23 = vpop.f32.mrf.mxu0 }
 0x18e   : > { %v443_v26 = vsel %vm439_vm1, %v1076_v23, -inf }
 0x18f   : > { %v430_v24 = vpop.f32.mrf.mxu0 }
 0x190   : > { %v440_v25 = vsel %vm439_vm1, %v430_v24, -inf }
 0x191   : > { %441 = vmax.xlane.f32.xlu1 %v440_v25 }
 0x195   : > { %444 = vmax.xlane.f32.xlu1 %v443_v26 }
 0x21a   : > { %v442_v27 = vpop.xlane.xlu1 %441 }
 0x21b   : > { %v446_v28 = vsub.f32 %v430_v24, %v442_v27 }
 0x21d   : > { %v448_v29 = vmul.f32 1.442695, %v446_v28 }
 0x21e   : > { %v445_v30 = vpop.xlane.xlu1 %444 }
 0x21f   : > { %1164 = vpow2.f32 %v448_v29  ;;  %v447_v31 = vsub.f32 %v1076_v23, %v445_v30 }
 0x221   : > { %v450_v32 = vmul.f32 1.442695, %v447_v31 }
 0x223   : > { %1166 = vpow2.f32 %v450_v32 }
 0x22c   : > { %v1165_v33 = vpop.eup %1164 }
 0x22d   : > { %v452_v34 = vsel %vm439_vm1, %v1165_v33, 0.0 }
 0x22e   : > { %453 = vadd.xlane.f32.xlu0 %v452_v34 }
 0x230   : > { %v1167_v35 = vpop.eup %1166 }
 0x231   : > { %v455_v36 = vsel %vm439_vm1, %v1167_v35, 0.0 }
 0x232   : > { %456 = vadd.xlane.f32.xlu1 %v455_v36 }
 0x2b7   : > { %v454_v37 = vpop.xlane.xlu0 %453 }
 0x2b8   : > { %1168 = vrcp.f32 %v454_v37 }
 0x2bb   : > { %v457_v38 = vpop.xlane.xlu1 %456 }
 0x2bc   : > { %1170 = vrcp.f32 %v457_v38 }
 0x2c5   : > { %v1169_v39 = vpop.eup %1168 }
 0x2c6   : > { %v1398_v40 = vmul.f32 %v1169_v39, %v1165_v33 }
 0x2c8   : > { %v465_v41 = vsel %vm439_vm1, %v1398_v40, -inf  ;;  %v568_v23 = vsel %vm439_vm1, %v1398_v40, 0.0 }
 0x2c9   : > { %v1171_v42 = vpop.eup %1170  ;;  %466 = vmax.xlane.f32.xlu0 %v465_v41 }
 0x2ca   : > { %v1402_v43 = vmul.f32 %v1171_v42, %v1167_v35 }
 0x2cc   : > { %v468_v44 = vsel %vm439_vm1, %v1402_v43, -inf  ;;  %v569_v21 = vsel %vm439_vm1, %v1402_v43, 0.0 }
 0x2cd   : > { %469 = vmax.xlane.f32.xlu1 %v468_v44  ;;  %v570_v24 = vadd.f32 %v569_v21, %v568_v23 }
 0x2cf   : > { %v571_v26 = vrot.slane %v570_v24, 4 }
 0x2d1   : > { %v572_v28 = vadd.f32 %v571_v26, %v570_v24 }
 0x2d3   : > { %v573_v30 = vrot.slane %v572_v28, 2 }
 0x2d5   : > { %v574_v32 = vadd.f32 %v573_v30, %v572_v28 }
 0x2d7   : > { %v575_v34 = vrot.slane %v574_v32, 1 }
 0x2d9   : > { %v576_v36 = vadd.f32 %v575_v34, %v574_v32 }
 0x352   : > { %v467_v49 = vpop.xlane.xlu0 %466 }
 0x353   : > { %vm471_vm2 = vcmp.ge.f32.partialorder %v1398_v40, %v467_v49 }
 0x354   : > { %v473_v50 = vsel %vm471_vm2, %v464_v48, 4.0 }
 0x355   : > { %v475_v51 = vsel %vm439_vm1, %v473_v50, inf }
 0x356   : > { %476 = vmin.xlane.f32.xlu0 %v475_v51  ;;  %v470_v52 = vpop.xlane.xlu1 %469 }
 0x357   : > { %vm472_vm3 = vcmp.ge.f32.partialorder %v1402_v43, %v470_v52 }
 0x358   : > { %v474_v53 = vsel %vm472_vm3, %v464_v48, 4.0 }
 0x359   : > { %v478_v54 = vsel %vm439_vm1, %v474_v53, inf }
 0x35a   : > { %479 = vmin.xlane.f32.xlu1 %v478_v54 }
 0x3df   : > { %v477_v55 = vpop.xlane.xlu0 %476 }
 0x3e0   : > { %vm481_vm4 = vcmp.eq.f32.partialorder %v464_v48, %v477_v55 }
 0x3e1   : > { %v491_v56 = vsel %vm481_vm4, -1.0, %v1398_v40  ;;  %v1015_v6 = vsel %vm481_vm4, 1.0, %v1282_v45 }
 0x3e2   : > { %v493_v57 = vsel %vm439_vm1, %v491_v56, -inf }
 0x3e3   : > { %494 = vmax.xlane.f32.xlu0 %v493_v57  ;;  %v480_v58 = vpop.xlane.xlu1 %479 }
 0x3e4   : > { %vm482_vm5 = vcmp.eq.f32.partialorder %v464_v48, %v480_v58 }
 0x3e5   : > { %v492_v59 = vsel %vm482_vm5, -1.0, %v1402_v43  ;;  %v1016_v12 = vsel %vm482_vm5, 1.0, %v1282_v45 }
 0x3e6   : > { %v496_v60 = vsel %vm439_vm1, %v492_v59, -inf }
 0x3e7   : > { %497 = vmax.xlane.f32.xlu1 %v496_v60 }
 0x46c   : > { %v495_v61 = vpop.xlane.xlu0 %494 }
 0x46d   : > { %vm499_vm6 = vcmp.ge.f32.partialorder %v491_v56, %v495_v61  ;;  %v517_v3 = vadd.f32 %v495_v61, %v467_v49 }
 0x46e   : > { %v501_v62 = vsel %vm499_vm6, %v464_v48, 4.0 }
 0x46f   : > { %v503_v63 = vsel %vm439_vm1, %v501_v62, inf  ;;  %1172 = vrcp.f32 %v517_v3 }
 0x470   : > { %504 = vmin.xlane.f32.xlu0 %v503_v63  ;;  %v498_v0 = vpop.xlane.xlu1 %497 }
 0x471   : > { %vm500_vm7 = vcmp.ge.f32.partialorder %v492_v59, %v498_v0  ;;  %v518_v4 = vadd.f32 %v498_v0, %v470_v52 }
 0x472   : > { %v502_v1 = vsel %vm500_vm7, %v464_v48, 4.0 }
 0x473   : > { %v506_v2 = vsel %vm439_vm1, %v502_v1, inf  ;;  %1174 = vrcp.f32 %v518_v4 }
 0x474   : > { %507 = vmin.xlane.f32.xlu1 %v506_v2 }
 0x47c   : > { %v1173_v11 = vpop.eup %1172 }
 0x480   : > { %v1175_v19 = vpop.eup %1174 }
 0x4f9   : > { %v505_v5 = vpop.xlane.xlu0 %504 }
 0x4fa   : > { %vm509_vm8 = vcmp.eq.f32.partialorder %v464_v48, %v505_v5 }
 0x4fb   : > { %v1017_v7 = vsel %vm509_vm8, 1.0, %v1282_v45 }
 0x4fc   : > { %v515_v8 = vadd.f32 %v1017_v7, %v1015_v6 }
 0x4fd   : > { %v508_v9 = vpop.xlane.xlu1 %507 }
 0x4fe   : > { %v519_v10 = vmul.f32 %v515_v8, %v1398_v40  ;;  %vm510_vm9 = vcmp.eq.f32.partialorder %v464_v48, %v508_v9  ;;  %v559_v16 = vsel %vm439_vm1, %v515_v8, 0.0 }
 0x4ff   : > { %v1018_v13 = vsel %vm510_vm9, 1.0, %v1282_v45 }
 0x500   : > { %v522_v14 = vmul.f32 %v1173_v11, %v519_v10  ;;  %v516_v15 = vadd.f32 %v1018_v13, %v1016_v12 }
 0x502   : > { %526 = vst.msk [vmem:[#allocation3] sm:$0xff] %vm525_vm10, %v522_v14  ;;  %v520_v17 = vmul.f32 %v516_v15, %v1402_v43  ;;  %v560_v18 = vsel %vm439_vm1, %v516_v15, 0.0 }
 0x503   : > { %v561_v20 = vadd.f32 %v560_v18, %v559_v16 }
 0x504   : > { %v524_v22 = vmul.f32 %v1175_v19, %v520_v17 }
 0x505   : > { %v562_v25 = vrot.slane %v561_v20, 4 }
 0x506   : > { %527 = vst.msk [vmem:[#allocation3 + $0x8] sm:$0xff] %vm525_vm10, %v524_v22  ;;  %541 = vrot.lane.b32.xlu1 %v524_v22, %s1283_s8  ;;  %532 = vrot.lane.b32.xlu0 %v524_v22, %s1284_s9 }
 0x507   : > { %v563_v27 = vadd.f32 %v562_v25, %v561_v20 }
 0x509   : > { %v564_v29 = vrot.slane %v563_v27, 2 }
 0x50a   : > { %530 = vrot.lane.b32.xlu1 %v522_v14, %s1284_s9 }
 0x50b   : > { %v565_v31 = vadd.f32 %v564_v29, %v563_v27 }
 0x50d   : > { %v566_v33 = vrot.slane %v565_v31, 1 }
 0x50e   : > { %539 = vrot.lane.b32.xlu1 %v522_v14, %s1283_s8 }
 0x50f   : > { %v567_v35 = vadd.f32 %v566_v33, %v565_v31 }
 0x511   : > { %v577_v37 = vmul.f32 %v576_v36, %v567_v35 }
 0x512   : > { %548 = vrot.lane.b32.xlu1 %v522_v14, %s1285_s10 }
 0x513   : > { %v578_v38 = vsel %vm439_vm1, %v577_v37, 0.0 }
 0x525   : > { %579 = vadd.xlane.f32.xlu0 %v578_v38 }
 0x53b   : > { %550 = vrot.lane.b32.xlu0 %v524_v22, %s1285_s10 }
 0x578   : > { %v542_v39 = vpop.permute.xlu1 %541  ;;  %v533_v40 = vpop.permute.xlu0 %532 }
 0x579   : > { %547 = vst.msk [vmem:[#allocation3 + $0x28] sm:$0xff] %vm525_vm10, %v542_v39  ;;  %538 = vst.msk [vmem:[#allocation3 + $0x18] sm:$0xff] %vm525_vm10, %v533_v40 }
 0x57c   : > { %v531_v41 = vpop.permute.xlu1 %530 }
 0x57d   : > { %537 = vst.msk [vmem:[#allocation3 + $0x10] sm:$0xff] %vm525_vm10, %v531_v41 }
 0x580   : > { %v540_v42 = vpop.permute.xlu1 %539 }
 0x581   : > { %546 = vst.msk [vmem:[#allocation3 + $0x20] sm:$0xff] %vm525_vm10, %v540_v42 }
 0x584   : > { %v549_v43 = vpop.permute.xlu1 %548 }
 0x585   : > { %555 = vst.msk [vmem:[#allocation3 + $0x30] sm:$0xff] %vm525_vm10, %v549_v43 }
 0x5ae   : > { %v580_v44 = vpop.xlane.xlu0 %579 }
 0x5af   : > { %v581_v45 = vmul.f32 0.0078125, %v580_v44 }
 0x5b1   : > { %583 = vst.msk [vmem:[#allocation9] sm:$0x1] %vm582_vm11, %v581_v45 }
 0x5b2   : > { %v551_v46 = vpop.permute.xlu0 %550 }
 0x5b3   : > { %556 = vst.msk [vmem:[#allocation3 + $0x38] sm:$0xff] %vm525_vm10, %v551_v46 }
 0x5b4 PF: > { %v589_v47 = vld [vmem:[%s1365_s16 + $0x18] sm:$0xff]  ;;  %v588_v48 = vld [vmem:[%s1365_s16 + $0x10] sm:$0xff]  ;;  %vm590_vm12 = vcmask 261120   ;;  %v584_v49 = vld [vmem:[#allocation2] sm:$0xff]  ;;  %s1027_s11 = sshll.u32 %s1337_s25, 4  ;;  %v1286_v1 = vmov 0  }
 0x5b5   : > { %1077 = vmatprep.subr.mxu1 %v589_v47  ;;  %v587_v50 = vld [vmem:[%s1365_s16 + $0x8] sm:$0xff]  ;;  %1085 = vmatprep.mubr.msk.f32.mxu1 %vm590_vm12, %v584_v49  ;;  %v586_v51 = vld [vmem:[%s1365_s16] sm:$0xff]  ;;  %v675_v53 = vld [vmem:[%s1370_s19 + $0x18] sm:$0xff]  ;;  %s860_s12 = scalar_lea.vmem [#allocation3], %s1027_s11  ;;  %vm775_vm13 = vcmask 523264   ;;  %p1028_p2 = scmp.ne.s32.totalorder %s1337_s25, 3 }
 0x5b6   : > { %1078 = vmatpush3.msra.mxu1 %v589_v47  ;;  %v585_v52 = vld [vmem:[#allocation2 + $0x8] sm:$0xff]  ;;  %v674_v54 = vld [vmem:[%s1370_s19 + $0x10] sm:$0xff]  ;;  %v672_v56 = vld [vmem:[%s1370_s19] sm:$0xff]  ;;  %1176 = vset.pattern.permute.xlu0 %v1286_v1 }
 0x5b7   : > { %1079 = vmatprep.subr.mxu1 %v588_v48  ;;  %v673_v55 = vld [vmem:[%s1370_s19 + $0x8] sm:$0xff]  ;;  %v774_v57 = vld [vmem:[%s1375_s22 + $0x38] sm:$0xff]  ;;  %v773_v58 = vld [vmem:[%s1375_s22 + $0x30] sm:$0xff] }
 0x5b8   : > { %1080 = vmatpush3.msra.mxu1 %v588_v48  ;;  %1099 = vmatprep.subr.mxu0 %v774_v57  ;;  %v772_v59 = vld [vmem:[%s1375_s22 + $0x28] sm:$0xff]  ;;  %v771_v60 = vld [vmem:[%s1375_s22 + $0x20] sm:$0xff]  ;;  %v770_v61 = vld [vmem:[%s1375_s22 + $0x18] sm:$0xff] }
 0x5b9   : > { %1081 = vmatprep.subr.mxu1 %v587_v50  ;;  %1100 = vmatpush3.msra.mxu0 %v774_v57  ;;  %v769_v62 = vld [vmem:[%s1375_s22 + $0x10] sm:$0xff]  ;;  %v768_v63 = vld [vmem:[%s1375_s22 + $0x8] sm:$0xff]  ;;  %v767_v0 = vld [vmem:[%s1375_s22] sm:$0xff] }
 0x5ba   : > { %1082 = vmatpush3.msra.mxu1 %v587_v50  ;;  %1101 = vmatprep.subr.mxu0 %v773_v58  ;;  %v861_v2 = vld [vmem:[%s860_s12] sm:$0xff]  ;;  %v862_v3 = vld [vmem:[%s860_s12 + $0x8] sm:$0xff]  ;;  %v858_v23 = vld [vmem:[#allocation4 + $0x8] sm:$0xff] }
 0x5bb   : > { %1083 = vmatprep.subr.mxu1 %v586_v51  ;;  %1102 = vmatpush3.msra.mxu0 %v773_v58  ;;  %v857_v26 = vld [vmem:[#allocation4] sm:$0xff] }
 0x5bc   : > { %1084 = vmatpush3.msra.mxu1 %v586_v51  ;;  %1103 = vmatprep.subr.mxu0 %v772_v59 }
 0x5bd   : > { %1086 = vmatmul.mubr.msk.f32.vlgmr.msra.gmra.mxu1 %vm590_vm12, %v585_v52  ;;  %1088 = vmatprep.subr.mxu1 %v675_v53 }
 0x5be   : > { %1089 = vmatpush3.msra.mxu1 %v675_v53  ;;  %1096 = vmatprep.mubr.msk.f32.mxu1 %vm590_vm12, %v584_v49 }
 0x5bf   : > { %1090 = vmatprep.subr.mxu1 %v674_v54  ;;  %1104 = vmatpush3.msra.mxu0 %v772_v59 }
 0x5c0   : > { %1091 = vmatpush3.msra.mxu1 %v674_v54  ;;  %1105 = vmatprep.subr.mxu0 %v771_v60 }
 0x5c1   : > { %1092 = vmatprep.subr.mxu1 %v673_v55  ;;  %1106 = vmatpush3.msra.mxu0 %v771_v60 }
 0x5c2   : > { %1093 = vmatpush3.msra.mxu1 %v673_v55  ;;  %1107 = vmatprep.subr.mxu0 %v770_v61 }
 0x5c3   : > { %1094 = vmatprep.subr.mxu1 %v672_v56  ;;  %1108 = vmatpush3.msra.mxu0 %v770_v61 }
 0x5c4   : > { %1095 = vmatpush3.msra.mxu1 %v672_v56  ;;  %1109 = vmatprep.subr.mxu0 %v769_v62 }
 0x5c5   : > { %1097 = vmatmul.mubr.msk.f32.vlgmr.msra.gmra.mxu1 %vm590_vm12, %v585_v52  ;;  %1110 = vmatpush3.msra.mxu0 %v769_v62 }
 0x5c6   : > { %1111 = vmatprep.subr.mxu0 %v768_v63  ;;  %865 = vperm.xlu0 %1176, %v861_v2  }
 0x5c7   : > { %1112 = vmatpush3.msra.mxu0 %v768_v63 }
 0x5c8   : > { %1113 = vmatprep.subr.mxu0 %v767_v0 }
 0x5c9   : > { %1114 = vmatpush3.msra.mxu0 %v767_v0 }
 0x5ca   : > { %870 = vperm.xlu0 %1176, %v862_v3  }
 0x641   : > { %v866_v20 = vpop.permute.xlu0 %865 }
 0x645   : > { %v871_v21 = vpop.permute.xlu0 %870 }
 0x67d   : > { %v1087_v4 = vpop.f32.mrf.mxu1 }
 0x67e   : > { %v1024_v5 = vmul.f32 -1.442695, %v1087_v4 }
 0x67f   : > { %v663_v6 = vpop.f32.mrf.mxu1 }
 0x680   : > { %1177 = vpow2.f32 %v1024_v5  ;;  %v1023_v7 = vmul.f32 -1.442695, %v663_v6 }
 0x682   : > { %1179 = vpow2.f32 %v1023_v7 }
 0x685   : > { %v1098_v13 = vpop.f32.mrf.mxu1 }
 0x687   : > { %v742_v17 = vpop.f32.mrf.mxu1 }
 0x68d   : > { %v1178_v8 = vpop.eup %1177 }
 0x68e   : > { %v758_v9 = vadd.f32 1.0, %v1178_v8 }
 0x68f   : > { %v1180_v10 = vpop.eup %1179 }
 0x690   : > { %1181 = vrcp.f32 %v758_v9  ;;  %v757_v11 = vadd.f32 1.0, %v1180_v10 }
 0x692   : > { %1183 = vrcp.f32 %v757_v11 }
 0x69d   : > { %v1182_v12 = vpop.eup %1181 }
 0x69e   : > { %v764_v15 = vmul.f32 %v1182_v12, %v1087_v4 }
 0x69f   : > { %v1184_v14 = vpop.eup %1183 }
 0x6a0   : > { %v763_v16 = vmul.f32 %v1184_v14, %v663_v6  ;;  %v766_v19 = vmul.f32 %v1098_v13, %v764_v15 }
 0x6a2   : > { %v765_v18 = vmul.f32 %v763_v16, %v742_v17 }
 0x6a4   : > { %1115 = vmatprep.mubr.msk.f32.mxu0 %vm775_vm13, %v765_v18 }
 0x6a5   : > { %1116 = vmatmul.mubr.msk.f32.vlgmr.msra.gmra.mxu0 %vm775_vm13, %v766_v19 }
 0x765   : > { %v1117_v22 = vpop.f32.mrf.mxu0 }
 0x766   : > { %v874_v24 = vmul.f32 %v1117_v22, %v871_v21 }
 0x767   : > { %v848_v25 = vpop.f32.mrf.mxu0 }
 0x768   : > { %v876_v27 = vadd.f32 %v874_v24, %v858_v23  ;;  %v873_v28 = vmul.f32 %v866_v20, %v848_v25  ;;  %882 = sbr.rel (%p1028_p2) target bundleno = 1911 (0x777), region = 56 }
 0x76a   : > { %878 = vst.msk [vmem:[#allocation4 + $0x8] sm:$0xff] %vm590_vm12, %v876_v27  ;;  %v875_v29 = vadd.f32 %v873_v28, %v857_v26 }
 0x76c   : > { %877 = vst.msk [vmem:[#allocation4] sm:$0xff] %vm590_vm12, %v875_v29 }
 0x76d   : > { %v883_v30 = vld [vmem:[%s1497_s0] sm:$0xff]  ;;  %v884_v32 = vld [vmem:[%s1497_s0 + $0x8] sm:$0xff] }
 0x771   : > { %v886_v34 = vld [vmem:[#allocation4 + $0x8] sm:$0xff] }
 0x772   : > { %v888_v35 = vadd.f32 %v886_v34, %v884_v32 }
 0x773   : > { %v885_v31 = vld [vmem:[#allocation4] sm:$0xff] }
 0x774   : > { %v887_v33 = vadd.f32 %v885_v31, %v883_v30  ;;  %890 = vst.msk [vmem:[#allocation8 + $0x8] sm:$0xff] %vm590_vm12, %v888_v35 }
 0x776   : > { %889 = vst.msk [vmem:[#allocation8] sm:$0xff] %vm590_vm12, %v887_v33 }
 0x777 PF: > { %p1136_p3 = scmp.eq.s32.totalorder %s1337_s25, 3  ;;  %s1287_s17 = smov [#allocation8]  }
 0x778   : > { %s897_s18 = sshll.u32 %s1287_s17, 4  ;;  %s898_s18 = int_to_ptr.vmem [resolvable:$true] %s897_s18 }
 0x779   : > { %s1211_s19 = scalar_lea.vmem %s898_s18, 256  ;;  %p1218_p7 = scmp.lt.s32.totalorder %s898_s18, %s898_s18 }
 0x77a   : > { %p1212_p4 = scmp.ne.s32.totalorder %s898_s18, %s1211_s19  ;;  %p1219_p8 = scmp.lt.s32.totalorder %s1211_s19, %s1211_s19 }
 0x77c   : > { %p1213_p5 = pnand %p1212_p4, %p1136_p3  ;;  %p1220_p9 = por %p1219_p8, %p1218_p7 }
 0x77e   : > { %p1214_p6 = pneg %p1213_p5 }
 0x780   : > { %p1221_p10 = pnand %p1220_p9, %p1214_p6 }
 0x782   : > { %1224 = shalt.err (!%p1221_p10)
}
 0x783   : > { %s1288_s20 = smov 128   ;;  %s1289_s21 = smov 8  }
 0x784   : > { %1123 = dma.vmem_to_hbm [thread:$0]  (%p1136_p3), %s898_s18, 256, %s1503_s6, [#allocation7], %s1288_s20, %s1288_s20, %s1289_s21  }
 0x785   : > { %s1290_s26 = smov [#allocation9]  }
 0x786   : > { %s911_s27 = sshll.u32 %s1290_s26, 4  ;;  %s912_s27 = int_to_ptr.vmem [resolvable:$true] %s911_s27 }
 0x787   : > { %s1235_s28 = scalar_lea.vmem %s912_s27, 16  ;;  %s1241_s29 = scalar_lea.vmem %s912_s27, 32 }
 0x788   : > { %p1236_p11 = scmp.ne.s32.totalorder %s912_s27, %s1235_s28  ;;  %p1242_p0 = scmp.lt.s32.totalorder %s912_s27, %s912_s27 }
 0x789   : > { %p1243_p1 = scmp.lt.s32.totalorder %s1241_s29, %s1235_s28 }
 0x78a   : > { %p1237_p12 = pnand %p1236_p11, %p1136_p3 }
 0x78b   : > { %p1244_p2 = por %p1243_p1, %p1242_p0 }
 0x78c   : > { %p1238_p13 = pneg %p1237_p12 }
 0x78e   : > { %p1245_p4 = pnand %p1244_p2, %p1238_p13 }
 0x790   : > { %1248 = shalt.err (!%p1245_p4)
}
 0x791   : > { %1125 = dma.vmem_to_hbm [thread:$0]  (%p1136_p3), %s912_s27, 16, %s1504_s7, [#allocation10]  }
 0x792   : > { %1268 = dma.done.wait (%p1136_p3), [#allocation7], 256  }
 0x793   : > { %1270 = vsyncadd (%p1136_p3), [#allocation7], 4294967040 }
 0x794   : > { %1272 = dma.done.wait (%p1136_p3), [#allocation10], 16  }
 0x795   : > { %1274 = vsyncadd (%p1136_p3), [#allocation10], 4294967280 }
 0x796 PF: > { %s21_s24 = sadd.s32 1, %s1277_s24  }
 0x797   : > { %p18_p5 = scmp.ge.s32.totalorder %s21_s24, 6  }
 0x799   :  { %20 = sbr.rel (!%p18_p5) target bundleno = 3 (0x3), region = 102 }
 0x79e   :  { %928 = vsyncpa [#allocation6], 1 }
 0x79f   :  { %930 = vsyncpa [#allocation6 + $0x1], 1 }
 0x7a0   :  { %931 = vsyncpa [#allocation7], 1 }
 0x7a1   :  { %933 = vsyncpa [#allocation7 + $0x1], 1 }
 0x7a2   :  { %934 = vsyncpa [#allocation10], 1 }

// kernel: _lambda_.2
= control target key start
LH: loop header
LB: loop body
LE: loop exit
PB: predicated region body
PF: predicated region fallthrough
CT: control target
= control target key end

     0   :  { %13 = vsyncpa [#allocation3], 0  ;;  %s1837_s0 = inlined_call_operand.hbm [shape: f32[16,32], index: 0, kind: input, shape index: {}]   ;;  %s1838_s1 = inlined_call_operand.vmem [shape: f32[1,32], index: 1, kind: input, shape index: {}]   ;;  %s1839_s2 = inlined_call_operand.hbm [shape: f32[32,64], index: 2, kind: input, shape index: {}]   ;;  %s1840_s3 = inlined_call_operand.hbm [shape: f32[32,32], index: 3, kind: input, shape index: {}]   ;;  %s1841_s4 = inlined_call_operand.vmem [shape: f32[16,48], index: 4, kind: input, shape index: {}]   ;;  %s1842_s5 = inlined_call_operand.vmem [shape: f32[16,48], index: 5, kind: input, shape index: {}]   ;;  %s1843_s6 = inlined_call_operand.hbm [shape: f32[48,48], index: 6, kind: input, shape index: {}]   ;;  %s1844_s7 = inlined_call_operand.vmem [shape: f32[16,8], index: 7, kind: input, shape index: {}]   ;;  %s1845_s8 = inlined_call_operand.vmem [shape: f32[16,32], index: 8, kind: output, shape index: {}]  }
   0x1   :  { %15 = vsyncpa [#allocation3 + $0x1], 0 }
   0x2   :  { %16 = vsyncpa [#allocation5], 0 }
   0x3   :  { %17 = vsyncpa [#allocation8], 0  ;;  %s1620_s27 = smov 0   ;;  %s1622_s28 = smov 0  }
   0x4   :  { %s1624_s29 = smov 0   ;;  %s1626_s30 = smov 0  }
   0x5 LB: > { %s1639_s9 = sadd.s32 4294967295, %s1556_s30   ;;  %p43_p0 = scmp.ne.s32.totalorder %s1548_s28, %s1544_s27  ;;  %s1556_s30 = sphi %s1626_s30, %s1862_s30   ;;  %s1552_s29 = sphi %s1624_s29, %s1861_s29   ;;  %s1548_s28 = sphi %s1622_s28, %s1860_s28   ;;  %s1544_s27 = sphi %s1620_s27, %s1859_s27  }
   0x6   : > { %p1846_p1 = scmp.eq.s32.totalorder %s1639_s9, 0  ;;  %p1190_p2 = scmp.ge.s32.totalorder %s1556_s30, 1 }
   0x7   : > { %p237_p3 = scmp.lt.s32.totalorder %s1556_s30, 3  ;;  %s1558_s12 = smov [#allocation4]  }
   0x8   : > { %p1647_p4 = por %p1846_p1, %p43_p0  ;;  %s252_s13 = sshll.u32 %s1558_s12, 4  ;;  %s253_s13 = int_to_ptr.vmem [resolvable:$true] %s252_s13 }
   0x9   : > { %p1651_p5 = pnand %p1190_p2, %p237_p3  ;;  %s1559_s15 = smov [#allocation6]  }
   0xa   : > { %s1849_s10 = scalar_select %p1647_p4, 1, 0 }
   0xb   : > { %s1850_s11 = scalar_select %p1651_p5, 1, 0 }
   0xc   : > { %p1321_p6 = pneg %p1651_p5  ;;  %s265_s16 = sshll.u32 %s1559_s15, 4  ;;  %s266_s16 = int_to_ptr.vmem [resolvable:$true] %s265_s16 }
   0xd   : > { %s1560_s17 = smov [#allocation7]   ;;  %s1419_s19 = scalar_lea.vmem %s253_s13, 512 }
   0xe   : > { %p1659_p7 = pnand %p1321_p6, %p1846_p1  ;;  %s278_s18 = sshll.u32 %s1560_s17, 4  ;;  %s279_s18 = int_to_ptr.vmem [resolvable:$true] %s278_s18 }
   0xf   : > { %p1420_p9 = scmp.ne.s32.totalorder %s253_s13, %s1419_s19  ;;  %p1427_p12 = scmp.lt.s32.totalorder %s253_s13, %s253_s13 }
  0x10   : > { %p1410_p8 = pneg %p1659_p7  ;;  %p1428_p13 = scmp.lt.s32.totalorder %s1419_s19, %s1419_s19 }
  0x12   : > { %p1422_p10 = pnand %p1420_p9, %p1410_p8  ;;  %p1429_p0 = por %p1428_p13, %p1427_p12 }
  0x14   : > { %p1423_p11 = pneg %p1422_p10 }
  0x16   : > { %p1430_p2 = pnand %p1429_p0, %p1423_p11 }
  0x18   : > { %1433 = shalt.err (!%p1430_p2)
}
  0x19   : > { %s1561_s20 = smov 128   ;;  %s1562_s21 = smov 8  }
  0x1a   : > { %1324 = dma.hbm_to_vmem [thread:$0]  (!%p1659_p7), %s1839_s2, 512, %s253_s13, [#allocation5], %s1561_s20, %s1561_s20, %s1562_s21  }
  0x1b   : > { %s1445_s24 = scalar_lea.vmem %s266_s16, 512  ;;  %p1453_p10 = scmp.lt.s32.totalorder %s266_s16, %s266_s16 }
  0x1c   : > { %p1446_p3 = scmp.ne.s32.totalorder %s266_s16, %s1445_s24  ;;  %p1454_p1 = scmp.lt.s32.totalorder %s1445_s24, %s1445_s24 }
  0x1e   : > { %p1448_p6 = pnand %p1446_p3, %p1410_p8  ;;  %p1455_p12 = por %p1454_p1, %p1453_p10 }
  0x20   : > { %p1449_p9 = pneg %p1448_p6 }
  0x22   : > { %p1456_p11 = pnand %p1455_p12, %p1449_p9 }
  0x24   : > { %1459 = shalt.err (!%p1456_p11)
}
  0x25   : > { %1327 = dma.hbm_to_vmem [thread:$0]  (!%p1659_p7), %s1840_s3, 512, %s266_s16, [#allocation5], %s1561_s20, %s1561_s20, %s1562_s21  }
  0x26   : > { %s1471_s27 = scalar_lea.vmem %s279_s18, 768  ;;  %p1479_p3 = scmp.lt.s32.totalorder %s279_s18, %s279_s18 }
  0x27   : > { %p1472_p13 = scmp.ne.s32.totalorder %s279_s18, %s1471_s27  ;;  %p1480_p6 = scmp.lt.s32.totalorder %s1471_s27, %s1471_s27 }
  0x29   : > { %p1474_p0 = pnand %p1472_p13, %p1410_p8  ;;  %p1481_p4 = por %p1480_p6, %p1479_p3 }
  0x2b   : > { %p1475_p2 = pneg %p1474_p0 }
  0x2d   : > { %p1482_p1 = pnand %p1481_p4, %p1475_p2 }
  0x2f   : > { %1485 = shalt.err (!%p1482_p1)
}
  0x30   : > { %1330 = dma.hbm_to_vmem [thread:$0]  (!%p1659_p7), %s1843_s6, 768, %s279_s18, [#allocation8], %s1561_s20, %s1561_s20, %s1562_s21  }
  0x31   : > { %s1690_s15 = sadd.s32 1, %s1556_s30   ;;  %s30_s17 = sadd.s32 1, %s1552_s29 }
  0x32   : > { %s27_s16 = ssub.s32 %s1556_s30, %s1690_s15  ;;  %p37_p8 = scmp.ne.s32.totalorder %s1552_s29, %s1548_s28 }
  0x33   : > { %p28_p4 = scmp.eq.s32.totalorder %s27_s16, 0  ;;  %p38_p9 = scmp.eq.s32.totalorder %s1556_s30, 0 }
  0x34   : > { %p1338_p10 = scmp.lt.s32.totalorder %s1556_s30, 2  ;;  %s295_s19 = sand.u32 1, %s1552_s29  }
  0x35   : > { %s1700_s14 = scalar_select %p28_p4, %s1552_s29, %s30_s17  }
  0x36   : > { %p39_p12 = por %p38_p9, %p37_p8  ;;  %s1195_s22 = sshll.u32 %s295_s19, 3 }
  0x37   : > { %s1196_s23 = sshll.u32 %s1556_s30, 7  ;;  %s299_s18 = scalar_lea.vmem [#allocation2], %s1195_s22 }
  0x38   : > { %s1707_s26 = scalar_lea.hbm %s1837_s0, %s1196_s23  ;;  %s306_s20 = sshll.u32 %s299_s18, 4  ;;  %s307_s20 = int_to_ptr.vmem [resolvable:$true] %s306_s20 }
  0x39   : > { %p1709_p7 = pnand %p1338_p10, %p39_p12  ;;  %s296_s27 = scalar_lea.sflag [#allocation3], %s295_s19 }
  0x3a   : > { %s1486_s12 = scalar_lea.hbm %s1707_s26, 128  ;;  %s1491_s16 = scalar_lea.hbm %s1837_s0, 256 }
  0x3b   : > { %p1487_p11 = scmp.ne.s32.totalorder %s1707_s26, %s1486_s12  ;;  %p1488_p13 = pneg %p1709_p7 }
  0x3c   : > { %p1492_p3 = scmp.lt.s32.totalorder %s1707_s26, %s1837_s0  ;;  %p1493_p6 = scmp.lt.s32.totalorder %s1491_s16, %s1486_s12 }
  0x3d   : > { %p1489_p0 = pnand %p1488_p13, %p1487_p11 }
  0x3e   : > { %p1494_p1 = por %p1493_p6, %p1492_p3 }
  0x3f   : > { %p1490_p2 = pneg %p1489_p0 }
  0x41   : > { %p1495_p4 = pnand %p1494_p1, %p1490_p2 }
  0x43   : > { %1498 = shalt.err (!%p1495_p4)
}
  0x44   : > { %s1499_s23 = scalar_lea.vmem %s307_s20, 128  ;;  %s1563_s19 = smov [#allocation2]  }
  0x45   : > { %p1500_p8 = scmp.ne.s32.totalorder %s307_s20, %s1499_s23  ;;  %s1504_s24 = sshll.u32 %s1563_s19, 4  ;;  %s1505_s24 = int_to_ptr.vmem [resolvable:$false] %s1504_s24 }
  0x46   : > { %s1506_s25 = scalar_lea.vmem %s1505_s24, 256  ;;  %p1507_p12 = scmp.lt.s32.totalorder %s307_s20, %s1505_s24 }
  0x47   : > { %p1502_p9 = pnand %p1500_p8, %p1488_p13  ;;  %p1508_p11 = scmp.lt.s32.totalorder %s1506_s25, %s1499_s23 }
  0x49   : > { %p1503_p10 = pneg %p1502_p9  ;;  %p1509_p0 = por %p1508_p11, %p1507_p12 }
  0x4b   : > { %p1510_p5 = pnand %p1509_p0, %p1503_p10 }
  0x4d   : > { %1513 = shalt.err (!%p1510_p5)
}
  0x4e   : > { %1334 = dma.hbm_to_vmem [thread:$0]  (!%p1709_p7), %s1707_s26, 128, %s307_s20, %s296_s27  }
  0x4f   : > { %p1853_p2 = scmp.ne.s32.totalorder %s1850_s11, 0 }
  0x50   : > { %s331_s18 = sand.u32 (!%p1853_p2), 1, %s1548_s28   ;;  %p1854_p13 = scmp.ne.s32.totalorder (!%p1853_p2), %s1849_s10, 0 }
  0x51   : > { %329 = sbr.rel (%p1853_p2) target bundleno = 1901 (0x76d), region = 52  ;;  %s1198_s12 = sshll.u32 (!%p1853_p2), %s331_s18, 3 }
  0x52   : > { %s332_s30 = scalar_lea.sflag (!%p1853_p2), [#allocation3], %s331_s18  ;;  %s335_s13 = scalar_lea.vmem (!%p1853_p2), [#allocation2], %s1198_s12 }
  0x56   : > { %1531 = dma.done.wait (%p1854_p13), %s332_s30, 128  }
  0x57   : > { %1533 = vsyncadd (%p1854_p13), %s332_s30, 4294967168  ;;  %p1855_p5 = scmp.eq.s32.totalorder %s1639_s9, 0 }
  0x59   : > { %1535 = dma.done.wait (%p1855_p5), [#allocation5], 1024   ;;  %p1856_p3 = pmov %p1855_p5 }
  0x5b   : > { %1537 = vsyncadd (%p1856_p3), [#allocation5], 4294966272  ;;  %p1857_p7 = pmov %p1856_p3 }
  0x5c   : > { %p1858_p6 = pmov %p1856_p3 }
  0x5d   : > { %1539 = dma.done.wait (%p1857_p7), [#allocation8], 768  }
  0x5e   : > { %1541 = vsyncadd (%p1858_p6), [#allocation8], 4294966528  ;;  %v1742_v0 = vld [vmem:[%s335_s13] sm:$0xff]  ;;  %vm401_vm0 = vcmask 261120   ;;  %v1564_v4 = vmov 0.0   ;;  %vm1565_vm1 = vmmov 0  }
  0x5f   : > { %v400_v1 = vmul.f32 %v1742_v0, %v1742_v0  ;;  %v421_v3 = vld [vmem:[#allocation4 + $0x18] sm:$0xff]  ;;  %1250 = vmatprep.subr.mxu0 %v1564_v4  ;;  %v420_v5 = vld [vmem:[#allocation4 + $0x10] sm:$0xff]  ;;  %1258 = vmatprep.mubr.msk.f32.mxu0 %vm1565_vm1, %v1564_v4  ;;  %v419_v6 = vld [vmem:[#allocation4 + $0x8] sm:$0xff]  ;;  %vm503_vm2 = vcmask 392192   ;;  %p387_p1 = scmp.lt.s32.totalorder %s1639_s9, 1  ;;  %vm587_vm3 = vcmask 64512  }
  0x60   : > { %1251 = vmatpush3.msra.mxu0 %v421_v3  ;;  %1261 = vmatprep.subr.mxu1 %v1564_v4  ;;  %v418_v7 = vld [vmem:[#allocation4] sm:$0xff]  ;;  %v502_v8 = vld [vmem:[#allocation7 + $0x28] sm:$0xff]  ;;  %v500_v10 = vld [vmem:[#allocation7 + $0x18] sm:$0xff]  ;;  %s1567_s23 = smov 120   ;;  %s1568_s19 = smov 88   ;;  %vm989_vm4 = vcmask 130048  }
  0x61   : > { %v402_v2 = vsel %vm401_vm0, %v400_v1, 0.0  ;;  %1252 = vmatprep.subr.mxu0 %v1564_v4  ;;  %1273 = vmatprep.mubr.msk.f32.mxu1 %vm1565_vm1, %v1564_v4  ;;  %v501_v9 = vld [vmem:[#allocation7 + $0x20] sm:$0xff]  ;;  %v499_v11 = vld [vmem:[#allocation7 + $0x10] sm:$0xff]  ;;  %v498_v12 = vld [vmem:[#allocation7 + $0x8] sm:$0xff]  ;;  %s1864_s9 = smov (!%p387_p1, %s1639_s9), 1  ;;  %s1569_s24 = smov 112  }
  0x62   : > { %403 = vadd.xlane.f32.xlu0 %v402_v2  ;;  %1253 = vmatpush3.msra.mxu0 %v420_v5  ;;  %v1205_v17 = vld [vmem:[%s1838_s1] ss:$0 sm:$0xff]  ;;  %v497_v20 = vld [vmem:[#allocation7] sm:$0xff]  ;;  %s1771_s26 = sshll.u32 %s1864_s9, 3  ;;  %s1566_s9 = smov 96   ;;  %v581_v36 = vld [vmem:[%s1844_s7 + $0x8] sm:$0xff] }
  0x63   : > { %1254 = vmatprep.subr.mxu0 %v1564_v4  ;;  %1262 = vmatpush3.msra.mxu1 %v502_v8  ;;  %s390_s27 = scalar_lea.vmem %s1841_s4, %s1771_s26  ;;  %s394_s22 = scalar_lea.vmem %s1842_s5, %s1771_s26  ;;  %v580_v39 = vld [vmem:[%s1844_s7] sm:$0xff]  ;;  %vm991_vm5 = vcmask 195584  }
  0x64   : > { %1255 = vmatpush3.msra.mxu0 %v419_v6  ;;  %1263 = vmatprep.subr.mxu1 %v1564_v4  ;;  %v495_v23 = vld [vmem:[%s390_s27] sm:$0xff]  ;;  %s1570_s13 = smov 72   ;;  %s1571_s10 = smov 80  }
  0x65   : > { %1256 = vmatprep.subr.mxu0 %v1564_v4  ;;  %1264 = vmatpush3.msra.mxu1 %v501_v9  ;;  %v577_v24 = vld [vmem:[%s394_s22] sm:$0xff]  ;;  %s1572_s11 = smov 8   ;;  %s1573_s20 = smov 24  }
  0x66   : > { %1257 = vmatpush3.msra.mxu0 %v418_v7  ;;  %1265 = vmatprep.subr.mxu1 %v1564_v4  ;;  %s1574_s21 = smov 16   ;;  %s398_s17 = scalar_lea.vmem %s1845_s8, %s1771_s26 }
  0x67   : > { %1266 = vmatpush3.msra.mxu1 %v500_v10 }
  0x68   : > { %1267 = vmatprep.subr.mxu1 %v1564_v4 }
  0x69   : > { %1268 = vmatpush3.msra.mxu1 %v499_v11 }
  0x6a   : > { %1269 = vmatprep.subr.mxu1 %v1564_v4 }
  0x6b   : > { %1270 = vmatpush3.msra.mxu1 %v498_v12 }
  0x6c   : > { %1271 = vmatprep.subr.mxu1 %v1564_v4 }
  0x6d   : > { %1272 = vmatpush3.msra.mxu1 %v497_v20 }
  0xeb   : > { %v404_v13 = vpop.xlane.xlu0 %403 }
  0xec   : > { %v406_v14 = vmul.f32 0.03125, %v404_v13 }
  0xee   : > { %v407_v15 = vadd.f32 1e-06, %v406_v14 }
  0xf0   : > { %1390 = vrsqrt.f32 %v407_v15 }
  0xfd   : > { %v1391_v16 = vpop.eup %1390 }
  0xfe   : > { %v409_v18 = vmul.f32 %v1391_v16, %v1742_v0 }
 0x100   : > { %v417_v19 = vmul.f32 %v1205_v17, %v409_v18 }
 0x102   : > { %1259 = vmatmul.mubr.msk.f32.vlgmr.msra.gmra.mxu0 %vm401_vm0, %v417_v19 }
 0x1c2   : > { %v1766_v21 = vpop.f32.mrf.mxu0 }
 0x1c3   : > { %1274 = vmatmul.mubr.msk.f32.vlgmr.msra.gmra.mxu1 %vm503_vm2, %v1766_v21  ;;  %v496_v26 = vmul.f32 %v495_v23, %v1766_v21 }
 0x1c4   : > { %v1260_v22 = vpop.f32.mrf.mxu0 }
 0x283   : > { %v573_v25 = vpop.f32.mrf.mxu1 }
 0x284   : > { %v578_v27 = vmul.f32 %v577_v24, %v573_v25  ;;  %v996_v25 = vld [vmem:[#allocation6 + $0x18] sm:$0xff] }
 0x285   : > { %v1275_v28 = vpop.f32.mrf.mxu1 }
 0x286   : > { %v579_v29 = vadd.f32 %v578_v27, %v496_v26  ;;  %v995_v26 = vld [vmem:[#allocation6 + $0x10] sm:$0xff]  ;;  %v994_v28 = vld [vmem:[#allocation6 + $0x8] sm:$0xff] }
 0x288   : > { %585 = vrot.lane.b32.xlu1 %v579_v29, %s1566_s9  ;;  %583 = vrot.lane.b32.xlu0 %v579_v29, %s1567_s23 }
 0x289   : > { %1278 = vmatprep.mubr.msk.f32.mxu0 %vm587_vm3, %v579_v29 }
 0x28c   : > { %783 = vrot.lane.b32.xlu1 %v579_v29, %s1568_s19 }
 0x290   : > { %779 = vrot.lane.b32.xlu1 %v579_v29, %s1569_s24  ;;  %v993_v29 = vld [vmem:[#allocation6] sm:$0xff] }
 0x2fa   : > { %v586_v30 = vpop.permute.xlu1 %585  ;;  %v584_v31 = vpop.permute.xlu0 %583 }
 0x2fb   : > { %1276 = vmatprep.subr.msk.mxu0 %vm587_vm3, %v586_v30  ;;  %781 = vrot.lane.b32.xlu1 %v584_v31, %s1569_s24 }
 0x2fc   : > { %1277 = vmatpush3.xpose.msk.msra.mxu0 %vm587_vm3, %v586_v30 }
 0x2fe   : > { %v784_v32 = vpop.permute.xlu1 %783 }
 0x2ff   : > { %1279 = vmatmul.mubr.msk.f32.vlgmr.msra.gmra.mxu0 %vm587_vm3, %v584_v31  ;;  %1286 = vmatprep.subr.msk.mxu1 %vm587_vm3, %v784_v32 }
 0x300   : > { %1287 = vmatpush3.xpose.msk.msra.mxu1 %vm587_vm3, %v784_v32 }
 0x301   : > { %1296 = vmatprep.subr.mxu1 %v1564_v4 }
 0x302   : > { %v780_v33 = vpop.permute.xlu1 %779 }
 0x303   : > { %1288 = vmatprep.mubr.msk.f32.mxu1 %vm587_vm3, %v780_v33 }
 0x36d   : > { %v782_v34 = vpop.permute.xlu1 %781 }
 0x36e   : > { %1289 = vmatmul.mubr.msk.f32.vlgmr.msra.gmra.mxu1 %vm587_vm3, %v782_v34 }
 0x36f   : > { %1304 = vmatprep.mubr.msk.f32.mxu1 %vm1565_vm1, %v1564_v4  ;;  %1297 = vmatpush3.msra.mxu1 %v996_v25 }
 0x370   : > { %1298 = vmatprep.subr.mxu1 %v1564_v4 }
 0x371   : > { %1299 = vmatpush3.msra.mxu1 %v995_v26 }
 0x372   : > { %1300 = vmatprep.subr.mxu1 %v1564_v4 }
 0x373   : > { %1301 = vmatpush3.msra.mxu1 %v994_v28 }
 0x374   : > { %1302 = vmatprep.subr.mxu1 %v1564_v4 }
 0x375   : > { %1303 = vmatpush3.msra.mxu1 %v993_v29 }
 0x3bf   : > { %v1280_v35 = vpop.f32.mrf.mxu0 }
 0x3c0   : > { %v670_v37 = vmul.f32 0.35355338, %v1280_v35 }
 0x3c1   : > { %v660_v38 = vpop.f32.mrf.mxu0 }
 0x3c2   : > { %v669_v40 = vmul.f32 0.35355338, %v660_v38  ;;  %v672_v41 = vadd.f32 %v670_v37, %v581_v36 }
 0x3c4   : > { %v676_v42 = vsel %vm587_vm3, %v672_v41, -inf  ;;  %v671_v43 = vadd.f32 %v669_v40, %v580_v39 }
 0x3c5   : > { %677 = vmax.xlane.f32.xlu0 %v676_v42 }
 0x3c6   : > { %v673_v44 = vsel %vm587_vm3, %v671_v43, -inf }
 0x3c7   : > { %674 = vmax.xlane.f32.xlu1 %v673_v44 }
 0x42e   : > { %v1290_v45 = vpop.f32.mrf.mxu1 }
 0x42f   : > { %v867_v47 = vmul.f32 0.35355338, %v1290_v45 }
 0x430   : > { %v857_v46 = vpop.f32.mrf.mxu1 }
 0x431   : > { %v866_v48 = vmul.f32 0.35355338, %v857_v46  ;;  %v869_v51 = vadd.f32 %v867_v47, %v581_v36 }
 0x433   : > { %v868_v49 = vadd.f32 %v866_v48, %v580_v39  ;;  %v873_v52 = vsel %vm587_vm3, %v869_v51, -inf }
 0x435   : > { %v870_v50 = vsel %vm587_vm3, %v868_v49, -inf }
 0x436   : > { %871 = vmax.xlane.f32.xlu1 %v870_v50 }
 0x43a   : > { %874 = vmax.xlane.f32.xlu1 %v873_v52 }
 0x44e   : > { %v678_v53 = vpop.xlane.xlu0 %677 }
 0x44f   : > { %v680_v54 = vsub.f32 %v672_v41, %v678_v53 }
 0x450   : > { %v675_v55 = vpop.xlane.xlu1 %674 }
 0x451   : > { %v683_v56 = vmul.f32 1.442695, %v680_v54  ;;  %v679_v57 = vsub.f32 %v671_v43, %v675_v55 }
 0x453   : > { %1392 = vpow2.f32 %v683_v56  ;;  %v681_v58 = vmul.f32 1.442695, %v679_v57 }
 0x455   : > { %1394 = vpow2.f32 %v681_v58 }
 0x460   : > { %v1393_v59 = vpop.eup %1392 }
 0x461   : > { %v688_v60 = vsel %vm587_vm3, %v1393_v59, 0.0 }
 0x462   : > { %v1395_v61 = vpop.eup %1394  ;;  %689 = vadd.xlane.f32.xlu1 %v688_v60 }
 0x463   : > { %v685_v62 = vsel %vm587_vm3, %v1395_v61, 0.0 }
 0x464   : > { %686 = vadd.xlane.f32.xlu0 %v685_v62 }
 0x4bf   : > { %v872_v63 = vpop.xlane.xlu1 %871 }
 0x4c0   : > { %v876_v1 = vsub.f32 %v868_v49, %v872_v63 }
 0x4c2   : > { %v878_v2 = vmul.f32 1.442695, %v876_v1 }
 0x4c3   : > { %v875_v3 = vpop.xlane.xlu1 %874 }
 0x4c4   : > { %1396 = vpow2.f32 %v878_v2  ;;  %v877_v5 = vsub.f32 %v869_v51, %v875_v3 }
 0x4c6   : > { %v880_v6 = vmul.f32 1.442695, %v877_v5 }
 0x4c8   : > { %1398 = vpow2.f32 %v880_v6 }
 0x4d1   : > { %v1397_v7 = vpop.eup %1396 }
 0x4d2   : > { %v882_v8 = vsel %vm587_vm3, %v1397_v7, 0.0 }
 0x4d3   : > { %883 = vadd.xlane.f32.xlu0 %v882_v8 }
 0x4d5   : > { %v1399_v9 = vpop.eup %1398 }
 0x4d6   : > { %v885_v10 = vsel %vm587_vm3, %v1399_v9, 0.0 }
 0x4d7   : > { %886 = vadd.xlane.f32.xlu1 %v885_v10 }
 0x4e8   : > { %892 = vrot.lane.b32.xlu1 %v1766_v21, %s1570_s13 }
 0x4e9   : > { %695 = vrot.lane.b32.xlu0 %v1766_v21, %s1571_s10 }
 0x4eb   : > { %v690_v14 = vpop.xlane.xlu1 %689 }
 0x4ed   : > { %v687_v11 = vpop.xlane.xlu0 %686 }
 0x4ee   : > { %1400 = vrcp.f32 %v687_v11 }
 0x4ef   : > { %1402 = vrcp.f32 %v690_v14 }
 0x4fb   : > { %v1401_v12 = vpop.eup %1400 }
 0x4fc   : > { %v693_v13 = vmul.f32 %v1401_v12, %v1395_v61  ;;  %v1403_v16 = vpop.eup %1402 }
 0x4fd   : > { %v694_v19 = vmul.f32 %v1403_v16, %v1393_v59 }
 0x4fe   : > { %1283 = vmatprep.mubr.msk.f32.mxu0 %vm587_vm3, %v693_v13 }
 0x55c   : > { %v884_v15 = vpop.xlane.xlu0 %883 }
 0x55d   : > { %1404 = vrcp.f32 %v884_v15 }
 0x560   : > { %v696_v17 = vpop.permute.xlu0 %695  ;;  %v887_v18 = vpop.xlane.xlu1 %886 }
 0x561   : > { %1406 = vrcp.f32 %v887_v18  ;;  %1281 = vmatprep.subr.mxu0 %v696_v17 }
 0x562   : > { %1282 = vmatpush3.msra.mxu0 %v696_v17 }
 0x563   : > { %1284 = vmatmul.mubr.msk.f32.vlgmr.msra.gmra.mxu0 %vm587_vm3, %v694_v19 }
 0x564   : > { %v893_v20 = vpop.permute.xlu1 %892 }
 0x565   : > { %1291 = vmatprep.subr.mxu0 %v893_v20 }
 0x566   : > { %1292 = vmatpush3.msra.mxu0 %v893_v20 }
 0x56a   : > { %v1405_v21 = vpop.eup %1404 }
 0x56b   : > { %v890_v22 = vmul.f32 %v1405_v21, %v1397_v7 }
 0x56d   : > { %1293 = vmatprep.mubr.msk.f32.mxu0 %vm587_vm3, %v890_v22 }
 0x56e   : > { %v1407_v23 = vpop.eup %1406 }
 0x56f   : > { %v891_v24 = vmul.f32 %v1407_v23, %v1399_v9 }
 0x571   : > { %1294 = vmatmul.mubr.msk.f32.vlgmr.msra.gmra.mxu0 %vm587_vm3, %v891_v24 }
 0x623   : > { %v1285_v27 = vpop.f32.mrf.mxu0 }
 0x624   : > { %977 = vrot.lane.b32.xlu1 %v1285_v27, %s1572_s11 }
 0x625   : > { %v770_v30 = vpop.f32.mrf.mxu0 }
 0x631   : > { %v1295_v31 = vpop.f32.mrf.mxu0 }
 0x632   : > { %985 = vrot.lane.b32.xlu1 %v1295_v31, %s1573_s20 }
 0x633   : > { %v967_v32 = vpop.f32.mrf.mxu0 }
 0x634   : > { %981 = vrot.lane.b32.xlu0 %v967_v32, %s1574_s21 }
 0x696   : > { %v978_v33 = vpop.permute.xlu1 %977 }
 0x697   : > { %v988_v34 = vsel %vm587_vm3, %v770_v30, %v978_v33 }
 0x6a4   : > { %v986_v36 = vpop.permute.xlu1 %985 }
 0x6a6   : > { %v982_v35 = vpop.permute.xlu0 %981 }
 0x6a7   : > { %v990_v37 = vsel %vm989_vm4, %v988_v34, %v982_v35 }
 0x6a8   : > { %v992_v38 = vsel %vm991_vm5, %v990_v37, %v986_v36 }
 0x6a9   : > { %1305 = vmatmul.mubr.msk.f32.vlgmr.msra.gmra.mxu1 %vm401_vm0, %v992_v38 }
 0x769   : > { %v1066_v4 = vpop.f32.mrf.mxu1 }
 0x76a   : > { %v1067_v39 = vadd.f32 %v1066_v4, %v1742_v0 }
 0x76b   : > { %v1306_v40 = vpop.f32.mrf.mxu1 }
 0x76c   : > { %1070 = vst.msk [vmem:[%s398_s17] sm:$0xff] %vm401_vm0, %v1067_v39 }
 0x76d PF: > { %p20_p4 = scmp.ge.s32.totalorder %s1690_s15, 4   ;;  %s1859_s27 = smov %s1548_s28 }
 0x76e   : > { %s1860_s28 = smov %s1552_s29  ;;  %s1861_s29 = smov %s1700_s14 }
 0x76f   : > { %s1862_s30 = smov %s1690_s15  ;;  %22 = sbr.rel (!%p20_p4) target bundleno = 5 (0x5), region = 110 }
 0x774   :  { %1090 = vsyncpa [#allocation3], 1 }
 0x775   :  { %1092 = vsyncpa [#allocation3 + $0x1], 1 }
 0x776   :  { %1093 = vsyncpa [#allocation5], 1 }
 0x777   :  { %1094 = vsyncpa [#allocation8], 1 }

</bundles_post_ra>
